<compile_context>
chip_gen: v7x
topology: tpu7x:2x2x1
jax: 0.10.0
libtpu: 0.0.40
codegen_flags: <defaults>
</compile_context>

<pallas_src>
import functools
import math

import jax
import jax.numpy as jnp
from jax.experimental import pallas as pl
from jax.experimental.pallas import tpu as pltpu

NUM_CLASSES = 81          # COCO: 80 classes + background
NUM_ANCHORS = 3           # anchors per feature location
PROPOSALS_PER_IMAGE = 8
FEAT_CHANNELS = 32
HEAD_HIDDEN = 64

LANE = 128                # lane-dense channel width used end-to-end
SUB = 8
CPAD = 128                # padded channel width (>= FEAT_CHANNELS, HEAD_HIDDEN)
CIN_PAD = 8               # conv input channels padded 3 -> 8
RPN_TM = 256              # RPN row tile
BBOX_XFORM_CLIP = math.log(1000.0 / 16.0)


def _round_up(x, m):
    return (x + m - 1) // m * m


# ----------------------------------------------------------------------------
# Parameters (identical shapes / init to the previous version)
# ----------------------------------------------------------------------------
def init_params(key):
    ks = jax.random.split(key, 12)

    def g(k, shape, fan_in):
        return jax.random.normal(k, shape, dtype=jnp.float32) / jnp.sqrt(fan_in)

    p = {}
    p["bb_w"] = g(ks[0], (FEAT_CHANNELS, 3, 3, 3), 27.0)
    p["bb_b"] = jnp.zeros((FEAT_CHANNELS,), jnp.float32)
    p["rpn_w"] = g(ks[1], (FEAT_CHANNELS, FEAT_CHANNELS), FEAT_CHANNELS)
    p["rpn_b"] = jnp.zeros((FEAT_CHANNELS,), jnp.float32)
    p["rpn_obj_w"] = g(ks[2], (FEAT_CHANNELS, NUM_ANCHORS), FEAT_CHANNELS)
    p["rpn_obj_b"] = jnp.zeros((NUM_ANCHORS,), jnp.float32)
    p["rpn_box_w"] = g(ks[3], (FEAT_CHANNELS, NUM_ANCHORS * 4), FEAT_CHANNELS)
    p["rpn_box_b"] = jnp.zeros((NUM_ANCHORS * 4,), jnp.float32)
    p["fc1_w"] = g(ks[4], (FEAT_CHANNELS, HEAD_HIDDEN), FEAT_CHANNELS)
    p["fc1_b"] = jnp.zeros((HEAD_HIDDEN,), jnp.float32)
    p["fc2_w"] = g(ks[5], (HEAD_HIDDEN, HEAD_HIDDEN), HEAD_HIDDEN)
    p["fc2_b"] = jnp.zeros((HEAD_HIDDEN,), jnp.float32)
    p["cls_w"] = g(ks[6], (HEAD_HIDDEN, NUM_CLASSES), HEAD_HIDDEN)
    p["cls_b"] = jnp.zeros((NUM_CLASSES,), jnp.float32)
    p["bbox_w"] = g(ks[7], (HEAD_HIDDEN, NUM_CLASSES * 4), HEAD_HIDDEN)
    p["bbox_b"] = jnp.zeros((NUM_CLASSES * 4,), jnp.float32)
    p["mean"] = jnp.array([0.485, 0.456, 0.406], jnp.float32)
    p["std"] = jnp.array([0.229, 0.224, 0.225], jnp.float32)
    return p


# ----------------------------------------------------------------------------
# Weight preparation (pure JAX, one-off): fold normalization, pack / pad heads
# ----------------------------------------------------------------------------
def _prep_backbone(params):
    # fold (x - mean)/std into the conv:  w' = w/std, b' = b - sum(w*mean/std)
    w = params["bb_w"] / params["std"][None, :, None, None]          # (Cf,3,3,3)
    b = params["bb_b"] - jnp.sum(
        params["bb_w"] * (params["mean"] / params["std"])[None, :, None, None],
        axis=(1, 2, 3),
    )
    # (Cf, Cin, ky, kx) -> (tap=ky*3+kx, Cin, Cf), pad Cin->CIN_PAD, Cf->CPAD
    w9 = jnp.transpose(w, (2, 3, 1, 0)).reshape(9, 3, FEAT_CHANNELS)
    w9 = jnp.pad(w9, ((0, 0), (0, CIN_PAD - 3), (0, CPAD - FEAT_CHANNELS)))
    bb = jnp.pad(b, (0, CPAD - FEAT_CHANNELS)).reshape(1, CPAD)
    return w9.astype(jnp.float32), bb.astype(jnp.float32)


def _prep_rpn(params):
    w1 = jnp.zeros((CPAD, CPAD), jnp.float32)
    w1 = w1.at[:FEAT_CHANNELS, :FEAT_CHANNELS].set(params["rpn_w"])
    b1 = jnp.pad(params["rpn_b"], (0, CPAD - FEAT_CHANNELS)).reshape(1, CPAD)
    # fused head columns: [obj(3) | dx(3) | dy(3) | dw(3) | dh(3)] -> pad to 128
    box_w = params["rpn_box_w"].reshape(FEAT_CHANNELS, NUM_ANCHORS, 4)
    box_w = jnp.transpose(box_w, (0, 2, 1)).reshape(FEAT_CHANNELS, 4 * NUM_ANCHORS)
    head = jnp.concatenate([params["rpn_obj_w"], box_w], axis=1)       # (32, 15)
    w2 = jnp.zeros((CPAD, CPAD), jnp.float32)
    w2 = w2.at[:FEAT_CHANNELS, : 5 * NUM_ANCHORS].set(head)
    box_b = params["rpn_box_b"].reshape(NUM_ANCHORS, 4).T.reshape(-1)
    b2 = jnp.concatenate([params["rpn_obj_b"], box_b])
    b2 = jnp.pad(b2, (0, CPAD - 5 * NUM_ANCHORS)).reshape(1, CPAD)
    return (w1.astype(jnp.bfloat16), b1, w2.astype(jnp.bfloat16), b2)


def _prep_roi(params):
    w1 = jnp.zeros((CPAD, CPAD), jnp.float32)
    w1 = w1.at[:FEAT_CHANNELS, :HEAD_HIDDEN].set(params["fc1_w"])
    b1 = jnp.pad(params["fc1_b"], (0, CPAD - HEAD_HIDDEN)).reshape(1, CPAD)
    w2 = jnp.zeros((CPAD, CPAD), jnp.float32)
    w2 = w2.at[:HEAD_HIDDEN, :HEAD_HIDDEN].set(params["fc2_w"])
    b2 = jnp.pad(params["fc2_b"], (0, CPAD - HEAD_HIDDEN)).reshape(1, CPAD)
    # fused cls + bbox head, 5 lane-dense groups of 128: [cls | dx | dy | dw | dh]
    bb = params["bbox_w"].reshape(HEAD_HIDDEN, NUM_CLASSES, 4)
    bb = jnp.transpose(bb, (2, 0, 1))                                  # (4, 64, 81)
    groups_w = [params["cls_w"]] + [bb[k] for k in range(4)]
    cols = [
        jnp.pad(g, ((0, CPAD - HEAD_HIDDEN), (0, LANE - g.shape[1]))) for g in groups_w
    ]
    w3 = jnp.concatenate(cols, axis=1)                                 # (128, 640)
    bbb = params["bbox_b"].reshape(NUM_CLASSES, 4).T                   # (4, 81)
    groups_b = [params["cls_b"]] + [bbb[k] for k in range(4)]
    b3 = jnp.concatenate(
        [jnp.pad(g, (0, LANE - g.shape[0])) for g in groups_b]
    ).reshape(1, 5 * LANE)
    return (w1.astype(jnp.bfloat16), b1, w2.astype(jnp.bfloat16), b2,
            w3.astype(jnp.bfloat16), b3)


# ----------------------------------------------------------------------------
# Pallas kernels
# ----------------------------------------------------------------------------
def _conv3x3_kernel(x_ref, w_ref, b_ref, o_ref, *, wp, m_out):
    """3x3 conv + ReLU: 9 shifted row-slices of the flattened padded image.

    x_ref : (m_in, CIN_PAD)  flattened padded image (row = hp*Wp + wp)
    w_ref : (9, CIN_PAD, CPAD), b_ref: (1, CPAD), o_ref: (m_out, CPAD)
    """
    acc = jnp.zeros((m_out, o_ref.shape[-1]), jnp.float32)
    for t in range(9):
        off = (t // 3) * wp + (t % 3)
        patch = x_ref[pl.ds(off, m_out), :]
        acc = acc + jnp.dot(patch, w_ref[t], preferred_element_type=jnp.float32)
    o_ref[...] = jnp.maximum(acc + b_ref[...], 0.0)


def _rpn_kernel(x_ref, w1_ref, b1_ref, w2_ref, b2_ref, anc_ref,
                obj_ref, x1_ref, y1_ref, x2_ref, y2_ref):
    """Fused RPN: 1x1 conv -> ReLU -> [obj|box] head -> anchor box decode."""
    a_n = NUM_ANCHORS
    t = jnp.dot(x_ref[...], w1_ref[...], preferred_element_type=jnp.float32)
    t = jnp.maximum(t + b1_ref[...], 0.0).astype(jnp.bfloat16)
    h = jnp.dot(t, w2_ref[...], preferred_element_type=jnp.float32) + b2_ref[...]

    obj = h[:, 0:a_n]
    dx = h[:, a_n:2 * a_n]
    dy = h[:, 2 * a_n:3 * a_n]
    dw = jnp.minimum(h[:, 3 * a_n:4 * a_n], BBOX_XFORM_CLIP)
    dh = jnp.minimum(h[:, 4 * a_n:5 * a_n], BBOX_XFORM_CLIP)

    a = anc_ref[...]                                   # (tm, 12) grouped by coord
    ax1 = a[:, 0:a_n]
    ay1 = a[:, a_n:2 * a_n]
    ax2 = a[:, 2 * a_n:3 * a_n]
    ay2 = a[:, 3 * a_n:4 * a_n]
    aw = ax2 - ax1
    ah = ay2 - ay1
    acx = ax1 + 0.5 * aw
    acy = ay1 + 0.5 * ah

    pcx = dx * aw + acx
    pcy = dy * ah + acy
    pw = jnp.exp(dw) * aw
    ph = jnp.exp(dh) * ah

    obj_ref[...] = obj
    x1_ref[...] = pcx - 0.5 * pw
    y1_ref[...] = pcy - 0.5 * ph
    x2_ref[...] = pcx + 0.5 * pw
    y2_ref[...] = pcy + 0.5 * ph


def _roi_kernel(x_ref, p_ref, w1_ref, b1_ref, w2_ref, b2_ref, w3_ref, b3_ref,
                cls_ref, x1_ref, y1_ref, x2_ref, y2_ref):
    """Fused ROI box head: fc1 -> fc2 -> [cls|bbox] head -> per-class decode."""
    h1 = jnp.dot(x_ref[...], w1_ref[...], preferred_element_type=jnp.float32)
    h1 = jnp.maximum(h1 + b1_ref[...], 0.0).astype(jnp.bfloat16)
    h2 = jnp.dot(h1, w2_ref[...], preferred_element_type=jnp.float32)
    h2 = jnp.maximum(h2 + b2_ref[...], 0.0).astype(jnp.bfloat16)
    y = jnp.dot(h2, w3_ref[...], preferred_element_type=jnp.float32) + b3_ref[...]

    p = p_ref[...]                                     # (n, 4)
    px1 = p[:, 0:1]
    py1 = p[:, 1:2]
    px2 = p[:, 2:3]
    py2 = p[:, 3:4]
    w = px2 - px1
    h = py2 - py1
    cx = px1 + 0.5 * w
    cy = py1 + 0.5 * h

    dx = y[:, LANE:2 * LANE]
    dy = y[:, 2 * LANE:3 * LANE]
    dw = jnp.minimum(y[:, 3 * LANE:4 * LANE], BBOX_XFORM_CLIP)
    dh = jnp.minimum(y[:, 4 * LANE:5 * LANE], BBOX_XFORM_CLIP)

    pcx = dx * w + cx                                  # (n,128) * / + (n,1) broadcast
    pcy = dy * h + cy
    pw = jnp.exp(dw) * w
    ph = jnp.exp(dh) * h

    cls_ref[...] = y[:, 0:LANE]
    x1_ref[...] = pcx - 0.5 * pw
    y1_ref[...] = pcy - 0.5 * ph
    x2_ref[...] = pcx + 0.5 * pw
    y2_ref[...] = pcy + 0.5 * ph


# ----------------------------------------------------------------------------
# Stage wrappers
# ----------------------------------------------------------------------------
def backbone_conv(x_nchw, w9, bconv):
    """Conv2d(3, 32, k=3, pad=1) + ReLU, normalisation folded into w9/bconv."""
    B, C, H, W = x_nchw.shape
    Hp, Wp = H + 2, W + 2
    m_out = H * Wp
    m_in = _round_up(Hp * Wp + 2 * Wp + 2, SUB)

    x = jnp.transpose(x_nchw, (0, 2, 3, 1))                         # NHWC
    x = jnp.pad(x, ((0, 0), (1, 1), (1, 1), (0, CIN_PAD - C)))      # halo + chan pad
    x = x.reshape(B, Hp * Wp, CIN_PAD)
    x = jnp.pad(x, ((0, 0), (0, m_in - Hp * Wp), (0, 0))).astype(jnp.float32)

    kern = functools.partial(_conv3x3_kernel, wp=Wp, m_out=m_out)
    out = pl.pallas_call(
        kern,
        grid=(B,),
        in_specs=[
            pl.BlockSpec((None, m_in, CIN_PAD), lambda b: (b, 0, 0)),
            pl.BlockSpec((9, CIN_PAD, CPAD), lambda b: (0, 0, 0)),
            pl.BlockSpec((1, CPAD), lambda b: (0, 0)),
        ],
        out_specs=pl.BlockSpec((None, m_out, CPAD), lambda b: (b, 0, 0)),
        out_shape=jax.ShapeDtypeStruct((B, m_out, CPAD), jnp.float32),
        compiler_params=pltpu.CompilerParams(dimension_semantics=("parallel",)),
    )(x, w9, bconv)

    feats = out.reshape(B, H, Wp, CPAD)[:, :, :W, :]                # drop wrap cols
    return feats                                                    # (B,H,W,CPAD)


def make_anchors_grouped(H, W):
    ys = jnp.arange(H, dtype=jnp.float32) + 0.5
    xs = jnp.arange(W, dtype=jnp.float32) + 0.5
    cy, cx = jnp.meshgrid(ys, xs, indexing="ij")
    sizes = jnp.array([4.0, 8.0, 16.0], jnp.float32)
    cx = cx.reshape(H * W, 1)
    cy = cy.reshape(H * W, 1)
    half = (sizes / 2.0).reshape(1, NUM_ANCHORS)
    x1 = cx - half
    y1 = cy - half
    x2 = cx + half
    y2 = cy + half
    return jnp.concatenate([x1, y1, x2, y2], axis=1)                # (HW, 12)


def rpn(rpn_weights, feats_nhwc, image_size_arr):
    B, H, W, Cp = feats_nhwc.shape
    HW = H * W
    A = NUM_ANCHORS
    M = B * HW
    Mp = _round_up(M, RPN_TM)

    x = feats_nhwc.reshape(M, Cp).astype(jnp.bfloat16)
    x = jnp.pad(x, ((0, Mp - M), (0, 0)))
    anc = jnp.tile(make_anchors_grouped(H, W), (B, 1))
    anc = jnp.pad(anc, ((0, Mp - M), (0, 0))).astype(jnp.float32)   # (Mp, 12)

    w1, b1, w2, b2 = rpn_weights
    row_spec = lambda i: (i, 0)
    full_spec = lambda i: (0, 0)
    out_sds = jax.ShapeDtypeStruct((Mp, A), jnp.float32)
    obj, bx1, by1, bx2, by2 = pl.pallas_call(
        _rpn_kernel,
        grid=(Mp // RPN_TM,),
        in_specs=[
            pl.BlockSpec((RPN_TM, CPAD), row_spec),
            pl.BlockSpec((CPAD, CPAD), full_spec),
            pl.BlockSpec((1, CPAD), full_spec),
            pl.BlockSpec((CPAD, CPAD), full_spec),
            pl.BlockSpec((1, CPAD), full_spec),
            pl.BlockSpec((RPN_TM, 4 * A), row_spec),
        ],
        out_specs=[pl.BlockSpec((RPN_TM, A), row_spec)] * 5,
        out_shape=(out_sds,) * 5,
        compiler_params=pltpu.CompilerParams(dimension_semantics=("parallel",)),
    )(x, w1, b1, w2, b2, anc)

    obj = obj[:M].reshape(B, HW * A)
    boxes = jnp.stack([bx1[:M], by1[:M], bx2[:M], by2[:M]], axis=-1)  # (M, A, 4)
    boxes = boxes.reshape(B, HW * A, 4)

    # per-image clipping (H, W) -> (W, H, W, H)
    hi = jnp.concatenate(
        [image_size_arr[:, 1:2], image_size_arr[:, 0:1],
         image_size_arr[:, 1:2], image_size_arr[:, 0:1]], axis=1)
    boxes = jnp.clip(boxes, 0.0, hi[:, None, :])

    # TODO(synk): torchvision RPN applies NMS before top-k; plain top-k here.
    _, idx = jax.lax.top_k(obj, PROPOSALS_PER_IMAGE)
    top = jnp.take_along_axis(boxes, idx[..., None], axis=1)         # (B, P, 4)
    return top, {}


def roi_heads(roi_weights, feats_nhwc, proposals, image_size_arr):
    B, H, W, Cp = feats_nhwc.shape
    P = proposals.shape[1]
    N = B * P
    Np = _round_up(N, SUB)

    # TODO(synk): true ROIAlign has no clean Pallas equivalent here; use global
    # average-pooled image features as per-proposal ROI features instead.
    pooled = jnp.mean(feats_nhwc, axis=(1, 2))                       # (B, CPAD)
    roi = jnp.repeat(pooled, P, axis=0)                              # (N, CPAD)
    roi = jnp.pad(roi, ((0, Np - N), (0, 0))).astype(jnp.bfloat16)
    props = jnp.pad(proposals.reshape(N, 4), ((0, Np - N), (0, 0))).astype(jnp.float32)

    w1, b1, w2, b2, w3, b3 = roi_weights
    full = lambda i: (0, 0)
    out_sds = jax.ShapeDtypeStruct((Np, LANE), jnp.float32)
    cls_o, bx1, by1, bx2, by2 = pl.pallas_call(
        _roi_kernel,
        grid=(1,),
        in_specs=[
            pl.BlockSpec((Np, CPAD), full),
            pl.BlockSpec((Np, 4), full),
            pl.BlockSpec((CPAD, CPAD), full),
            pl.BlockSpec((1, CPAD), full),
            pl.BlockSpec((CPAD, CPAD), full),
            pl.BlockSpec((1, CPAD), full),
            pl.BlockSpec((CPAD, 5 * LANE), full),
            pl.BlockSpec((1, 5 * LANE), full),
        ],
        out_specs=[pl.BlockSpec((Np, LANE), full)] * 5,
        out_shape=(out_sds,) * 5,
    )(roi, props, w1, b1, w2, b2, w3, b3)

    cls_logits = cls_o[:N, :NUM_CLASSES]
    boxes = jnp.stack(
        [bx1[:N, :NUM_CLASSES], by1[:N, :NUM_CLASSES],
         bx2[:N, :NUM_CLASSES], by2[:N, :NUM_CLASSES]], axis=-1)      # (N, 81, 4)

    hi = jnp.concatenate(
        [image_size_arr[:, 1:2], image_size_arr[:, 0:1],
         image_size_arr[:, 1:2], image_size_arr[:, 0:1]], axis=1)
    hi_n = jnp.repeat(hi, P, axis=0)                                  # (N, 4)
    boxes = jnp.clip(boxes, 0.0, hi_n[:, None, :])

    scores = jax.nn.softmax(cls_logits, axis=-1)
    # TODO(synk): per-class NMS omitted; take best non-background class per proposal.
    labels = jnp.argmax(scores[:, 1:], axis=-1) + 1
    det_scores = jnp.take_along_axis(scores, labels[:, None], axis=1)[:, 0]
    det_boxes = jnp.take_along_axis(boxes, labels[:, None, None], axis=1)[:, 0]

    detections = []
    for b in range(B):
        sl = slice(b * P, (b + 1) * P)
        detections.append(
            {"boxes": det_boxes[sl], "labels": labels[sl], "scores": det_scores[sl]}
        )
    return detections, {}


def transform_postprocess(detections, image_sizes, original_image_sizes):
    out = []
    for det, (h, w), (oh, ow) in zip(detections, image_sizes, original_image_sizes):
        rw = float(ow) / float(w)
        rh = float(oh) / float(h)
        scale = jnp.array([rw, rh, rw, rh], jnp.float32)
        d = dict(det)
        d["boxes"] = det["boxes"] * scale
        out.append(d)
    return out


# ----------------------------------------------------------------------------
# GeneralizedRCNN forward (inference path, save_feat=False)
# ----------------------------------------------------------------------------
def generalized_rcnn_forward(params, images):
    original_image_sizes = [tuple(int(s) for s in img.shape[-2:]) for img in images]

    # self.transform: normalisation folded into the backbone conv; identity resize.
    # TODO(synk): torchvision's data-dependent resize is not implemented (identity).
    batched = jnp.stack(images, axis=0)                              # (B, C, H, W)
    image_sizes = [tuple(int(s) for s in img.shape[-2:]) for img in images]
    image_size_arr = jnp.array(image_sizes, jnp.float32)

    # self.backbone
    w9, bconv = _prep_backbone(params)
    feats_nhwc = backbone_conv(batched, w9, bconv)                   # (B,H,W,128)
    features_nchw = jnp.transpose(feats_nhwc[..., :FEAT_CHANNELS], (0, 3, 1, 2))
    features_dict = {0: features_nchw}                               # OrderedDict-like

    # self.rpn
    proposals, proposal_losses = rpn(_prep_rpn(params), feats_nhwc, image_size_arr)

    # self.roi_heads
    detections, detector_losses = roi_heads(
        _prep_roi(params), feats_nhwc, proposals, image_size_arr)

    # save_feat=False inference path
    bbox_wst_processed_img = detections[0]["boxes"][:]
    detections = transform_postprocess(detections, image_sizes, original_image_sizes)
    losses = {}
    losses.update(detector_losses)
    losses.update(proposal_losses)
    return [bbox_wst_processed_img, detections, features_dict, image_sizes]


if __name__ == "__main__":
    key = jax.random.PRNGKey(0)
    pkey, dkey = jax.random.split(key)
    params = init_params(pkey)

    B, C, H, W = 2, 3, 16, 16
    imgs = jax.random.uniform(dkey, (B, C, H, W), dtype=jnp.float32)
    images = [imgs[i] for i in range(B)]                             # list[Tensor]-like

    result = generalized_rcnn_forward(params, images)
    bbox_wst_processed_img, detections, features, image_sizes = result

    jax.block_until_ready(bbox_wst_processed_img)
    jax.block_until_ready(detections[0]["boxes"])
    jax.block_until_ready(features[0])

    assert bbox_wst_processed_img.shape == (PROPOSALS_PER_IMAGE, 4)
    assert detections[0]["boxes"].shape == (PROPOSALS_PER_IMAGE, 4)
    assert features[0].shape == (B, FEAT_CHANNELS, H, W)
    print("KERNEL_OK")
</pallas_src>

<mosaic_0001>
module attributes {stable_mosaic.version = 11 : i64} {
  func.func @_conv3x3_kernel(%arg0: i32, %arg1: memref<1x368x8xf32, #tpu.memory_space<vmem>>, %arg2: memref<9x8x128xf32, #tpu.memory_space<vmem>>, %arg3: memref<1x128xf32, #tpu.memory_space<vmem>>, %arg4: memref<1x288x128xf32, #tpu.memory_space<vmem>>) attributes {dimension_semantics = [#tpu.dimension_semantics<parallel>], iteration_bounds = array<i64: 2>, scalar_prefetch = 0 : i64, scratch_operands = 0 : i64, tpu.core_type = #tpu.core_type<tc>, window_params = [{transform_indices = @transform_0, window_bounds = array<i64: 1, 368, 8>}, {pipeline_mode = #tpu.pipeline_mode<synchronous>, transform_indices = @transform_1, window_bounds = array<i64: 9, 8, 128>}, {pipeline_mode = #tpu.pipeline_mode<synchronous>, transform_indices = @transform_2, window_bounds = array<i64: 1, 128>}, {transform_indices = @transform_3, window_bounds = array<i64: 1, 288, 128>}]} {
    %cst = arith.constant 0.000000e+00 : f32
    %0 = vector.broadcast %cst : f32 to vector<288x128xf32>
    %c0 = arith.constant 0 : index
    %c0_0 = arith.constant 0 : index
    %c0_1 = arith.constant 0 : index
    %1 = vector.load %arg1[%c0, %c0_0, %c0_1] : memref<1x368x8xf32, #tpu.memory_space<vmem>>, vector<1x288x8xf32>
    %2 = vector.shape_cast %1 : vector<1x288x8xf32> to vector<288x8xf32>
    %c0_2 = arith.constant 0 : index
    %c0_3 = arith.constant 0 : index
    %c0_4 = arith.constant 0 : index
    %3 = vector.load %arg2[%c0_2, %c0_3, %c0_4] : memref<9x8x128xf32, #tpu.memory_space<vmem>>, vector<1x8x128xf32>
    %4 = vector.shape_cast %3 : vector<1x8x128xf32> to vector<8x128xf32>
    %cst_5 = arith.constant dense<0.000000e+00> : vector<288x128xf32>
    %5 = tpu.matmul %2, %4, %cst_5 {dimension_numbers = #tpu.dot_dimension_numbers<[1], [0], [0], [1], [0, 0, 1, 1], [], []>} : vector<288x8xf32>, vector<8x128xf32>, vector<288x128xf32> -> vector<288x128xf32>
    %6 = arith.addf %0, %5 : vector<288x128xf32>
    %c0_6 = arith.constant 0 : index
    %c1 = arith.constant 1 : index
    %c0_7 = arith.constant 0 : index
    %7 = vector.load %arg1[%c0_6, %c1, %c0_7] : memref<1x368x8xf32, #tpu.memory_space<vmem>>, vector<1x288x8xf32>
    %8 = vector.shape_cast %7 : vector<1x288x8xf32> to vector<288x8xf32>
    %c1_8 = arith.constant 1 : index
    %c0_9 = arith.constant 0 : index
    %c0_10 = arith.constant 0 : index
    %9 = vector.load %arg2[%c1_8, %c0_9, %c0_10] : memref<9x8x128xf32, #tpu.memory_space<vmem>>, vector<1x8x128xf32>
    %10 = vector.shape_cast %9 : vector<1x8x128xf32> to vector<8x128xf32>
    %cst_11 = arith.constant dense<0.000000e+00> : vector<288x128xf32>
    %11 = tpu.matmul %8, %10, %cst_11 {dimension_numbers = #tpu.dot_dimension_numbers<[1], [0], [0], [1], [0, 0, 1, 1], [], []>} : vector<288x8xf32>, vector<8x128xf32>, vector<288x128xf32> -> vector<288x128xf32>
    %12 = arith.addf %6, %11 : vector<288x128xf32>
    %c0_12 = arith.constant 0 : index
    %c2 = arith.constant 2 : index
    %c0_13 = arith.constant 0 : index
    %13 = vector.load %arg1[%c0_12, %c2, %c0_13] : memref<1x368x8xf32, #tpu.memory_space<vmem>>, vector<1x288x8xf32>
    %14 = vector.shape_cast %13 : vector<1x288x8xf32> to vector<288x8xf32>
    %c2_14 = arith.constant 2 : index
    %c0_15 = arith.constant 0 : index
    %c0_16 = arith.constant 0 : index
    %15 = vector.load %arg2[%c2_14, %c0_15, %c0_16] : memref<9x8x128xf32, #tpu.memory_space<vmem>>, vector<1x8x128xf32>
    %16 = vector.shape_cast %15 : vector<1x8x128xf32> to vector<8x128xf32>
    %cst_17 = arith.constant dense<0.000000e+00> : vector<288x128xf32>
    %17 = tpu.matmul %14, %16, %cst_17 {dimension_numbers = #tpu.dot_dimension_numbers<[1], [0], [0], [1], [0, 0, 1, 1], [], []>} : vector<288x8xf32>, vector<8x128xf32>, vector<288x128xf32> -> vector<288x128xf32>
    %18 = arith.addf %12, %17 : vector<288x128xf32>
    %c0_18 = arith.constant 0 : index
    %c18 = arith.constant 18 : index
    %c0_19 = arith.constant 0 : index
    %19 = vector.load %arg1[%c0_18, %c18, %c0_19] : memref<1x368x8xf32, #tpu.memory_space<vmem>>, vector<1x288x8xf32>
    %20 = vector.shape_cast %19 : vector<1x288x8xf32> to vector<288x8xf32>
    %c3 = arith.constant 3 : index
    %c0_20 = arith.constant 0 : index
    %c0_21 = arith.constant 0 : index
    %21 = vector.load %arg2[%c3, %c0_20, %c0_21] : memref<9x8x128xf32, #tpu.memory_space<vmem>>, vector<1x8x128xf32>
    %22 = vector.shape_cast %21 : vector<1x8x128xf32> to vector<8x128xf32>
    %cst_22 = arith.constant dense<0.000000e+00> : vector<288x128xf32>
    %23 = tpu.matmul %20, %22, %cst_22 {dimension_numbers = #tpu.dot_dimension_numbers<[1], [0], [0], [1], [0, 0, 1, 1], [], []>} : vector<288x8xf32>, vector<8x128xf32>, vector<288x128xf32> -> vector<288x128xf32>
    %24 = arith.addf %18, %23 : vector<288x128xf32>
    %c0_23 = arith.constant 0 : index
    %c19 = arith.constant 19 : index
    %c0_24 = arith.constant 0 : index
    %25 = vector.load %arg1[%c0_23, %c19, %c0_24] : memref<1x368x8xf32, #tpu.memory_space<vmem>>, vector<1x288x8xf32>
    %26 = vector.shape_cast %25 : vector<1x288x8xf32> to vector<288x8xf32>
    %c4 = arith.constant 4 : index
    %c0_25 = arith.constant 0 : index
    %c0_26 = arith.constant 0 : index
    %27 = vector.load %arg2[%c4, %c0_25, %c0_26] : memref<9x8x128xf32, #tpu.memory_space<vmem>>, vector<1x8x128xf32>
    %28 = vector.shape_cast %27 : vector<1x8x128xf32> to vector<8x128xf32>
    %cst_27 = arith.constant dense<0.000000e+00> : vector<288x128xf32>
    %29 = tpu.matmul %26, %28, %cst_27 {dimension_numbers = #tpu.dot_dimension_numbers<[1], [0], [0], [1], [0, 0, 1, 1], [], []>} : vector<288x8xf32>, vector<8x128xf32>, vector<288x128xf32> -> vector<288x128xf32>
    %30 = arith.addf %24, %29 : vector<288x128xf32>
    %c0_28 = arith.constant 0 : index
    %c20 = arith.constant 20 : index
    %c0_29 = arith.constant 0 : index
    %31 = vector.load %arg1[%c0_28, %c20, %c0_29] : memref<1x368x8xf32, #tpu.memory_space<vmem>>, vector<1x288x8xf32>
    %32 = vector.shape_cast %31 : vector<1x288x8xf32> to vector<288x8xf32>
    %c5 = arith.constant 5 : index
    %c0_30 = arith.constant 0 : index
    %c0_31 = arith.constant 0 : index
    %33 = vector.load %arg2[%c5, %c0_30, %c0_31] : memref<9x8x128xf32, #tpu.memory_space<vmem>>, vector<1x8x128xf32>
    %34 = vector.shape_cast %33 : vector<1x8x128xf32> to vector<8x128xf32>
    %cst_32 = arith.constant dense<0.000000e+00> : vector<288x128xf32>
    %35 = tpu.matmul %32, %34, %cst_32 {dimension_numbers = #tpu.dot_dimension_numbers<[1], [0], [0], [1], [0, 0, 1, 1], [], []>} : vector<288x8xf32>, vector<8x128xf32>, vector<288x128xf32> -> vector<288x128xf32>
    %36 = arith.addf %30, %35 : vector<288x128xf32>
    %c0_33 = arith.constant 0 : index
    %c36 = arith.constant 36 : index
    %c0_34 = arith.constant 0 : index
    %37 = vector.load %arg1[%c0_33, %c36, %c0_34] : memref<1x368x8xf32, #tpu.memory_space<vmem>>, vector<1x288x8xf32>
    %38 = vector.shape_cast %37 : vector<1x288x8xf32> to vector<288x8xf32>
    %c6 = arith.constant 6 : index
    %c0_35 = arith.constant 0 : index
    %c0_36 = arith.constant 0 : index
    %39 = vector.load %arg2[%c6, %c0_35, %c0_36] : memref<9x8x128xf32, #tpu.memory_space<vmem>>, vector<1x8x128xf32>
    %40 = vector.shape_cast %39 : vector<1x8x128xf32> to vector<8x128xf32>
    %cst_37 = arith.constant dense<0.000000e+00> : vector<288x128xf32>
    %41 = tpu.matmul %38, %40, %cst_37 {dimension_numbers = #tpu.dot_dimension_numbers<[1], [0], [0], [1], [0, 0, 1, 1], [], []>} : vector<288x8xf32>, vector<8x128xf32>, vector<288x128xf32> -> vector<288x128xf32>
    %42 = arith.addf %36, %41 : vector<288x128xf32>
    %c0_38 = arith.constant 0 : index
    %c37 = arith.constant 37 : index
    %c0_39 = arith.constant 0 : index
    %43 = vector.load %arg1[%c0_38, %c37, %c0_39] : memref<1x368x8xf32, #tpu.memory_space<vmem>>, vector<1x288x8xf32>
    %44 = vector.shape_cast %43 : vector<1x288x8xf32> to vector<288x8xf32>
    %c7 = arith.constant 7 : index
    %c0_40 = arith.constant 0 : index
    %c0_41 = arith.constant 0 : index
    %45 = vector.load %arg2[%c7, %c0_40, %c0_41] : memref<9x8x128xf32, #tpu.memory_space<vmem>>, vector<1x8x128xf32>
    %46 = vector.shape_cast %45 : vector<1x8x128xf32> to vector<8x128xf32>
    %cst_42 = arith.constant dense<0.000000e+00> : vector<288x128xf32>
    %47 = tpu.matmul %44, %46, %cst_42 {dimension_numbers = #tpu.dot_dimension_numbers<[1], [0], [0], [1], [0, 0, 1, 1], [], []>} : vector<288x8xf32>, vector<8x128xf32>, vector<288x128xf32> -> vector<288x128xf32>
    %48 = arith.addf %42, %47 : vector<288x128xf32>
    %c0_43 = arith.constant 0 : index
    %c38 = arith.constant 38 : index
    %c0_44 = arith.constant 0 : index
    %49 = vector.load %arg1[%c0_43, %c38, %c0_44] : memref<1x368x8xf32, #tpu.memory_space<vmem>>, vector<1x288x8xf32>
    %50 = vector.shape_cast %49 : vector<1x288x8xf32> to vector<288x8xf32>
    %c8 = arith.constant 8 : index
    %c0_45 = arith.constant 0 : index
    %c0_46 = arith.constant 0 : index
    %51 = vector.load %arg2[%c8, %c0_45, %c0_46] : memref<9x8x128xf32, #tpu.memory_space<vmem>>, vector<1x8x128xf32>
    %52 = vector.shape_cast %51 : vector<1x8x128xf32> to vector<8x128xf32>
    %cst_47 = arith.constant dense<0.000000e+00> : vector<288x128xf32>
    %53 = tpu.matmul %50, %52, %cst_47 {dimension_numbers = #tpu.dot_dimension_numbers<[1], [0], [0], [1], [0, 0, 1, 1], [], []>} : vector<288x8xf32>, vector<8x128xf32>, vector<288x128xf32> -> vector<288x128xf32>
    %54 = arith.addf %48, %53 : vector<288x128xf32>
    %c0_48 = arith.constant 0 : index
    %c0_49 = arith.constant 0 : index
    %55 = vector.load %arg3[%c0_48, %c0_49] : memref<1x128xf32, #tpu.memory_space<vmem>>, vector<1x128xf32>
    %56 = vector.broadcast %55 : vector<1x128xf32> to vector<288x128xf32>
    %57 = arith.addf %54, %56 : vector<288x128xf32>
    %cst_50 = arith.constant 0.000000e+00 : f32
    %58 = vector.broadcast %cst_50 : f32 to vector<288x128xf32>
    %59 = arith.maximumf %57, %58 : vector<288x128xf32>
    %c0_51 = arith.constant 0 : index
    %c0_52 = arith.constant 0 : index
    %c0_53 = arith.constant 0 : index
    %60 = vector.load %arg4[%c0_51, %c0_52, %c0_53] : memref<1x288x128xf32, #tpu.memory_space<vmem>>, vector<1x288x128xf32>
    %61 = vector.shape_cast %60 : vector<1x288x128xf32> to vector<288x128xf32>
    %62 = vector.shape_cast %59 : vector<288x128xf32> to vector<1x288x128xf32>
    tpu.vector_store %arg4[%c0_51, %c0_52, %c0_53], %62 {strides = array<i32>} : memref<1x288x128xf32, #tpu.memory_space<vmem>>, vector<1x288x128xf32>,
    return
  }
  func.func @transform_0(%arg0: i32) -> (i32, i32, i32) {
    %c0_i32 = arith.constant 0 : i32
    %c0_i32_0 = arith.constant 0 : i32
    %c0_i32_1 = arith.constant 0 : i32
    return %arg0, %c0_i32, %c0_i32_0 : i32, i32, i32
  }
  func.func @transform_1(%arg0: i32) -> (i32, i32, i32) {
    %c0_i32 = arith.constant 0 : i32
    %c0_i32_0 = arith.constant 0 : i32
    %c0_i32_1 = arith.constant 0 : i32
    %c0_i32_2 = arith.constant 0 : i32
    return %c0_i32, %c0_i32_0, %c0_i32_1 : i32, i32, i32
  }
  func.func @transform_2(%arg0: i32) -> (i32, i32) {
    %c0_i32 = arith.constant 0 : i32
    %c0_i32_0 = arith.constant 0 : i32
    %c0_i32_1 = arith.constant 0 : i32
    return %c0_i32, %c0_i32_0 : i32, i32
  }
  func.func @transform_3(%arg0: i32) -> (i32, i32, i32) {
    %c0_i32 = arith.constant 0 : i32
    %c0_i32_0 = arith.constant 0 : i32
    %c0_i32_1 = arith.constant 0 : i32
    return %arg0, %c0_i32, %c0_i32_0 : i32, i32, i32
  }
}

</mosaic_0001>

<bundles_post_ra>
// kernel: tpu_custom_call.1
= control target key start
LH: loop header
LB: loop body
LE: loop exit
PB: predicated region body
PF: predicated region fallthrough
CT: control target
= control target key end

     0   :  { %8 = vsyncpa [#allocation3], 0  ;;  %s6842_s0 = inlined_call_operand.vmem [shape: f32[2,368,8], index: 0, kind: input, shape index: {}]   ;;  %s6843_s1 = inlined_call_operand.vmem [shape: f32[9,8,128], index: 1, kind: input, shape index: {}]   ;;  %s6844_s2 = inlined_call_operand.vmem [shape: f32[1,128], index: 2, kind: input, shape index: {}]   ;;  %s6845_s3 = inlined_call_operand.hbm [shape: f32[2,288,128], index: 3, kind: output, shape index: {}]  }
   0x1   :  { %10 = vsyncpa [#allocation3 + $0x1], 0  ;;  %s5730_s12 = smov 0   ;;  %s5732_s13 = smov 0  }
   0x2   :  { %s5734_s14 = smov 0   ;;  %s5736_s15 = smov 0  }
   0x3 LB: > { %s5751_s16 = sadd.s32 4294967295, %s5705_s15   ;;  %s4131_s17 = sadd.s32 4294967294, %s5705_s15   ;;  %s5705_s15 = sphi %s5736_s15, %s6851_s15   ;;  %s5701_s14 = sphi %s5734_s14, %s6850_s14   ;;  %s5697_s13 = sphi %s5732_s13, %s6849_s13   ;;  %s5693_s12 = sphi %s5730_s12, %s6848_s12  }
   0x4   : > { %s5755_s18 = sadd.s32 1, %s5705_s15   ;;  %s91_s19 = sadd.s32 1, %s5701_s14 }
   0x5   : > { %s88_s20 = ssub.s32 %s5705_s15, %s5755_s18  ;;  %p101_p0 = scmp.ne.s32.totalorder %s5701_s14, %s5697_s13 }
   0x6   : > { %p89_p1 = scmp.eq.s32.totalorder %s88_s20, 0  ;;  %p102_p2 = scmp.eq.s32.totalorder %s5751_s16, 1 }
   0x7   : > { %p107_p3 = scmp.ne.s32.totalorder %s5697_s13, %s5693_s12  ;;  %p108_p4 = scmp.eq.s32.totalorder %s4131_s17, 1 }
   0x8   : > { %s5766_s21 = scalar_select %p89_p1, %s5701_s14, %s91_s19  }
   0x9   : > { %p5768_p5 = por %p102_p2, %p101_p0  ;;  %p5772_p6 = por %p108_p4, %p107_p3 }
   0xa   : > { %p4134_p7 = scmp.ge.s32.totalorder %s5705_s15, 1  ;;  %p140_p8 = scmp.lt.s32.totalorder %s5705_s15, 3 }
   0xc   : > { %p141_p9 = pnand %p4134_p7, %p140_p8 }
   0xd   : > { %v4136_v0 = vld [vmem:[%s6843_s1 + $0x8] sm:$0xff] (!%p141_p9)  ;;  %v5784_v1 = vld [vmem:[%s6843_s1 + $0x20] sm:$0xff] (!%p141_p9)  ;;  %p164_p10 = scmp.lt.s32.totalorder (!%p141_p9), %s5751_s16, 1  ;;  %vm244_vm0 = vcmask (!%p141_p9), 64512   ;;  %v5814_v10 = vld [vmem:[%s6843_s1 + $0x30] sm:$0xff] (!%p141_p9)  ;;  %s161_s29 = sand.u32 (!%p141_p9), 1, %s5697_s13  }
   0xe   : > { %144 = sbr.rel (%p141_p9) target bundleno = 582 (0x246), region = 32  ;;  %v205_v2 = vld [vmem:[%s6843_s1] sm:$0xff] (!%p141_p9)  ;;  %4805 = vmatprep.subr.mxu1 (!%p141_p9), %v4136_v0  ;;  %5029 = vmatprep.subr.mxu0 (!%p141_p9), %v5784_v1  ;;  %v4320_v3 = vld [vmem:[%s6843_s1 + $0x28] sm:$0xff] (!%p141_p9)  ;;  %v5819_v11 = vld [vmem:[%s6843_s1 + $0x10] sm:$0xff] (!%p141_p9)  ;;  %s5707_s19 = smov (!%p141_p9), [#allocation2]  }
   0xf   : > { %4806 = vmatpush3.msra.mxu1 (!%p141_p9), %v4136_v0  ;;  %5030 = vmatpush3.msra.mxu0 (!%p141_p9), %v5784_v1  ;;  %v5898_v48 = vld [vmem:[%s6843_s1 + $0x38] sm:$0xff] (!%p141_p9)  ;;  %s5599_s30 = smul.u32 (!%p141_p9), 288, %s161_s29  ;;  %s5647_s20 = sshll.u32 (!%p141_p9), %s5707_s19, 4  ;;  %s5648_s20 = int_to_ptr.vmem [resolvable:$false] %s5647_s20 }
  0x10   : > { %4861 = vmatprep.subr.mxu1 (!%p141_p9), %v205_v2  ;;  %5085 = vmatprep.subr.mxu0 (!%p141_p9), %v4320_v3  ;;  %s5601_s7 = smul.u32 (!%p141_p9), 4608, %s5751_s16  ;;  %s5649_s24 = scalar_lea.vmem (!%p141_p9), %s5648_s20, 9216 }
  0x12   : > { %s6793_s11 = scalar_lea.hbm (!%p141_p9), %s6845_s3, %s5601_s7 }
  0x15   : > { %s165_s5 = scalar_select %p164_p10, %s5751_s16, 1 }
  0x16   : > { %s6801_s16 = scalar_lea.sflag [#allocation3], %s161_s29 }
  0x17   : > { %s5600_s6 = smul.u32 368, %s165_s5 }
  0x19   : > { %s5799_s9 = scalar_lea.vmem %s6842_s0, %s5600_s6  ;;  %s6712_s6 = scalar_lea.vmem [#allocation2], %s5599_s30 }
  0x1a   : > { %v206_v4 = vld [vmem:[%s5799_s9 + $0x1] sm:$0xff]  ;;  %v1805_v5 = vld [vmem:[%s5799_s9 + $0x13] sm:$0xff]  ;;  %v207_v6 = vld [vmem:[%s5799_s9 + $0x9] sm:$0xff]  ;;  %s4069_s8 = sshll.u32 %s6712_s6, 4  ;;  %s6795_s8 = int_to_ptr.vmem [resolvable:$true] %s4069_s8 }
  0x1b   : > { %4807 = vmatprep.mubr.msk.f32.mxu1 %vm244_vm0, %v206_v4  ;;  %5031 = vmatprep.mubr.msk.f32.mxu0 %vm244_vm0, %v1805_v5  ;;  %v1806_v7 = vld [vmem:[%s5799_s9 + $0x1b] sm:$0xff]  ;;  %v208_v8 = vld [vmem:[%s5799_s9 + $0x11] sm:$0xff]  ;;  %v1807_v9 = vld [vmem:[%s5799_s9 + $0x23] sm:$0xff]  ;;  %s5643_s17 = scalar_lea.vmem %s6795_s8, 4608  ;;  %p5650_p0 = scmp.lt.s32.totalorder %s6795_s8, %s5648_s20 }
  0x1c   : > { %4808 = vmatmul.mubr.msk.f32.vlgmr.msra.gmra.mrb[0].mxu1 %vm244_vm0, %v207_v6  ;;  %5032 = vmatmul.mubr.msk.f32.vlgmr.msra.gmra.mrb[0].mxu0 %vm244_vm0, %v1806_v7  ;;  %v209_v12 = vld [vmem:[%s5799_s9 + $0x19] sm:$0xff]  ;;  %v1808_v13 = vld [vmem:[%s5799_s9 + $0x2b] sm:$0xff]  ;;  %v210_v14 = vld [vmem:[%s5799_s9 + $0x21] sm:$0xff]  ;;  %p5644_p11 = scmp.ne.s32.totalorder %s6795_s8, %s5643_s17  ;;  %p5651_p1 = scmp.lt.s32.totalorder %s5649_s24, %s5643_s17 }
  0x1d   : > { %4862 = vmatpush3.msra.mxu1 %v205_v2  ;;  %5086 = vmatpush3.msra.mxu0 %v4320_v3  ;;  %v1809_v15 = vld [vmem:[%s5799_s9 + $0x33] sm:$0xff]  ;;  %v211_v16 = vld [vmem:[%s5799_s9 + $0x29] sm:$0xff]  ;;  %v1810_v17 = vld [vmem:[%s5799_s9 + $0x3b] sm:$0xff] }
  0x1e   : > { %4810 = vmatprep.mubr.msk.f32.mxu1 %vm244_vm0, %v208_v8  ;;  %5034 = vmatprep.mubr.msk.f32.mxu0 %vm244_vm0, %v1807_v9  ;;  %v212_v18 = vld [vmem:[%s5799_s9 + $0x31] sm:$0xff]  ;;  %v1811_v19 = vld [vmem:[%s5799_s9 + $0x43] sm:$0xff]  ;;  %v213_v20 = vld [vmem:[%s5799_s9 + $0x39] sm:$0xff]  ;;  %p5645_p12 = pnand %p5644_p11, %p5768_p5  ;;  %p5652_p2 = por %p5651_p1, %p5650_p0 }
  0x1f   : > { %5141 = vmatprep.subr.mxu0 %v5814_v10  ;;  %4917 = vmatprep.subr.mxu1 %v5819_v11  ;;  %v1812_v21 = vld [vmem:[%s5799_s9 + $0x4b] sm:$0xff]  ;;  %v214_v22 = vld [vmem:[%s5799_s9 + $0x41] sm:$0xff]  ;;  %v1813_v23 = vld [vmem:[%s5799_s9 + $0x53] sm:$0xff] }
  0x20   : > { %4811 = vmatmul.mubr.msk.f32.gmra.mrb[2].mxu1 %vm244_vm0, %v209_v12  ;;  %5035 = vmatmul.mubr.msk.f32.gmra.mrb[2].mxu0 %vm244_vm0, %v1808_v13  ;;  %v215_v24 = vld [vmem:[%s5799_s9 + $0x49] sm:$0xff]  ;;  %v1814_v25 = vld [vmem:[%s5799_s9 + $0x5b] sm:$0xff]  ;;  %v216_v26 = vld [vmem:[%s5799_s9 + $0x51] sm:$0xff]  ;;  %p5646_p13 = pneg %p5645_p12 }
  0x21   : > { %4813 = vmatprep.mubr.msk.f32.mxu1 %vm244_vm0, %v210_v14  ;;  %5037 = vmatprep.mubr.msk.f32.mxu0 %vm244_vm0, %v1809_v15  ;;  %v1815_v27 = vld [vmem:[%s5799_s9 + $0x63] sm:$0xff]  ;;  %v217_v28 = vld [vmem:[%s5799_s9 + $0x59] sm:$0xff]  ;;  %v1816_v29 = vld [vmem:[%s5799_s9 + $0x6b] sm:$0xff] }
  0x22   : > { %v218_v30 = vld [vmem:[%s5799_s9 + $0x61] sm:$0xff]  ;;  %v1817_v31 = vld [vmem:[%s5799_s9 + $0x73] sm:$0xff]  ;;  %v219_v32 = vld [vmem:[%s5799_s9 + $0x69] sm:$0xff]  ;;  %p5653_p3 = pnand %p5652_p2, %p5646_p13 }
  0x23   : > { %v1818_v33 = vld [vmem:[%s5799_s9 + $0x7b] sm:$0xff]  ;;  %v220_v34 = vld [vmem:[%s5799_s9 + $0x71] sm:$0xff]  ;;  %v1819_v35 = vld [vmem:[%s5799_s9 + $0x83] sm:$0xff] }
  0x24   : > { %4814 = vmatmul.mubr.msk.f32.gmra.mrb[4].mxu1 %vm244_vm0, %v211_v16  ;;  %5038 = vmatmul.mubr.msk.f32.gmra.mrb[4].mxu0 %vm244_vm0, %v1810_v17  ;;  %v221_v36 = vld [vmem:[%s5799_s9 + $0x79] sm:$0xff]  ;;  %v1820_v37 = vld [vmem:[%s5799_s9 + $0x8b] sm:$0xff]  ;;  %v222_v38 = vld [vmem:[%s5799_s9 + $0x81] sm:$0xff] }
  0x25   : > { %4816 = vmatprep.mubr.msk.f32.mxu1 %vm244_vm0, %v212_v18  ;;  %5040 = vmatprep.mubr.msk.f32.mxu0 %vm244_vm0, %v1811_v19  ;;  %v1821_v39 = vld [vmem:[%s5799_s9 + $0x93] sm:$0xff]  ;;  %v223_v40 = vld [vmem:[%s5799_s9 + $0x89] sm:$0xff]  ;;  %v1822_v41 = vld [vmem:[%s5799_s9 + $0x9b] sm:$0xff] }
  0x26   : > { %v224_v42 = vld [vmem:[%s5799_s9 + $0x91] sm:$0xff]  ;;  %v225_v44 = vld [vmem:[%s5799_s9 + $0x99] sm:$0xff]  ;;  %v226_v46 = vld [vmem:[%s5799_s9 + $0xa1] sm:$0xff] }
  0x27   : > { %v2232_v43 = vld [vmem:[%s5799_s9 + $0x14] sm:$0xff]  ;;  %v2233_v45 = vld [vmem:[%s5799_s9 + $0x1c] sm:$0xff]  ;;  %v5893_v47 = vld [vmem:[%s5799_s9 + $0x24] sm:$0xff] }
  0x28   : > { %4817 = vmatmul.mubr.msk.f32.gmra.mrb[6].mxu1 %vm244_vm0, %v213_v20  ;;  %5041 = vmatmul.mubr.msk.f32.gmra.mrb[6].mxu0 %vm244_vm0, %v1812_v21  ;;  %v227_v49 = vld [vmem:[%s5799_s9 + $0xa9] sm:$0xff]  ;;  %v228_v51 = vld [vmem:[%s5799_s9 + $0xb1] sm:$0xff]  ;;  %v229_v53 = vld [vmem:[%s5799_s9 + $0xb9] sm:$0xff] }
  0x29   : > { %4819 = vmatprep.mubr.msk.f32.mxu1 %vm244_vm0, %v214_v22  ;;  %5043 = vmatprep.mubr.msk.f32.mxu0 %vm244_vm0, %v1813_v23  ;;  %v5906_v50 = vld [vmem:[%s5799_s9 + $0x2c] sm:$0xff]  ;;  %v5912_v52 = vld [vmem:[%s5799_s9 + $0x34] sm:$0xff]  ;;  %v5923_v54 = vld [vmem:[%s5799_s9 + $0x3c] sm:$0xff] }
  0x2a   : > { %v230_v55 = vld [vmem:[%s5799_s9 + $0xc1] sm:$0xff]  ;;  %v231_v57 = vld [vmem:[%s5799_s9 + $0xc9] sm:$0xff]  ;;  %v232_v59 = vld [vmem:[%s5799_s9 + $0xd1] sm:$0xff] }
  0x2b   : > { %v5927_v56 = vld [vmem:[%s5799_s9 + $0x44] sm:$0xff]  ;;  %v5937_v58 = vld [vmem:[%s5799_s9 + $0x4c] sm:$0xff]  ;;  %v5941_v60 = vld [vmem:[%s5799_s9 + $0x54] sm:$0xff] }
  0x2c   : > { %4820 = vmatmul.mubr.msk.f32.gmra.mrb[8].mxu1 %vm244_vm0, %v215_v24  ;;  %5044 = vmatmul.mubr.msk.f32.gmra.mrb[8].mxu0 %vm244_vm0, %v1814_v25  ;;  %v233_v61 = vld [vmem:[%s5799_s9 + $0xd9] sm:$0xff]  ;;  %v234_v63 = vld [vmem:[%s5799_s9 + $0xe1] sm:$0xff]  ;;  %v235_v2 = vld [vmem:[%s5799_s9 + $0xe9] sm:$0xff] }
  0x2d   : > { %4822 = vmatprep.mubr.msk.f32.mxu1 %vm244_vm0, %v216_v26  ;;  %5046 = vmatprep.mubr.msk.f32.mxu0 %vm244_vm0, %v1815_v27  ;;  %v5951_v62 = vld [vmem:[%s5799_s9 + $0x5c] sm:$0xff]  ;;  %v5955_v0 = vld [vmem:[%s5799_s9 + $0x64] sm:$0xff]  ;;  %v5965_v3 = vld [vmem:[%s5799_s9 + $0x6c] sm:$0xff] }
  0x2e   : > { %v236_v4 = vld [vmem:[%s5799_s9 + $0xf1] sm:$0xff]  ;;  %v237_v6 = vld [vmem:[%s5799_s9 + $0xf9] sm:$0xff]  ;;  %v238_v8 = vld [vmem:[%s5799_s9 + $0x101] sm:$0xff] }
  0x2f   : > { %v5969_v5 = vld [vmem:[%s5799_s9 + $0x74] sm:$0xff]  ;;  %v5979_v7 = vld [vmem:[%s5799_s9 + $0x7c] sm:$0xff]  ;;  %v5983_v9 = vld [vmem:[%s5799_s9 + $0x84] sm:$0xff] }
  0x30   : > { %4823 = vmatmul.mubr.msk.f32.gmra.mrb[10].mxu1 %vm244_vm0, %v217_v28  ;;  %5047 = vmatmul.mubr.msk.f32.gmra.mrb[10].mxu0 %vm244_vm0, %v1816_v29  ;;  %v5993_v12 = vld [vmem:[%s5799_s9 + $0x8c] sm:$0xff]  ;;  %v5997_v14 = vld [vmem:[%s5799_s9 + $0x94] sm:$0xff]  ;;  %v6007_v16 = vld [vmem:[%s5799_s9 + $0x9c] sm:$0xff] }
  0x31   : > { %4825 = vmatprep.mubr.msk.f32.mxu1 %vm244_vm0, %v218_v30  ;;  %5049 = vmatprep.mubr.msk.f32.mxu0 %vm244_vm0, %v1817_v31  ;;  %v240_v13 = vld [vmem:[%s5799_s9 + $0x111] sm:$0xff]  ;;  %v241_v15 = vld [vmem:[%s5799_s9 + $0x119] sm:$0xff]  ;;  %v6011_v18 = vld [vmem:[%s5799_s9 + $0xa4] sm:$0xff] }
  0x32   : > { %v169_v17 = vld [vmem:[%s5799_s9] sm:$0xff]  ;;  %v170_v19 = vld [vmem:[%s5799_s9 + $0x8] sm:$0xff]  ;;  %v171_v21 = vld [vmem:[%s5799_s9 + $0x10] sm:$0xff] }
  0x33   : > { %v6021_v20 = vld [vmem:[%s5799_s9 + $0xac] sm:$0xff]  ;;  %v6025_v22 = vld [vmem:[%s5799_s9 + $0xb4] sm:$0xff]  ;;  %v6039_v25 = vld [vmem:[%s5799_s9 + $0xbc] sm:$0xff] }
  0x34   : > { %4826 = vmatmul.mubr.msk.f32.gmra.mrb[12].mxu1 %vm244_vm0, %v219_v32  ;;  %5050 = vmatmul.mubr.msk.f32.gmra.mrb[12].mxu0 %vm244_vm0, %v1818_v33  ;;  %v6030_v23 = vld [vmem:[%s6843_s1 + $0x18] sm:$0xff]  ;;  %v173_v26 = vld [vmem:[%s5799_s9 + $0x20] sm:$0xff]  ;;  %v6056_v28 = vld [vmem:[%s5799_s9 + $0xcc] sm:$0xff] }
  0x35   : > { %4828 = vmatprep.mubr.msk.f32.mxu1 %vm244_vm0, %v220_v34  ;;  %5052 = vmatprep.mubr.msk.f32.mxu0 %vm244_vm0, %v1819_v35  ;;  %v172_v24 = vld [vmem:[%s5799_s9 + $0x18] sm:$0xff]  ;;  %v6045_v27 = vld [vmem:[%s5799_s9 + $0xc4] sm:$0xff]  ;;  %v175_v29 = vld [vmem:[%s5799_s9 + $0x30] sm:$0xff] }
  0x36   : > { %v6060_v30 = vld [vmem:[%s5799_s9 + $0xd4] sm:$0xff]  ;;  %v6070_v32 = vld [vmem:[%s5799_s9 + $0xdc] sm:$0xff]  ;;  %v6074_v34 = vld [vmem:[%s5799_s9 + $0xe4] sm:$0xff] }
  0x37   : > { %v176_v31 = vld [vmem:[%s5799_s9 + $0x38] sm:$0xff]  ;;  %v177_v33 = vld [vmem:[%s5799_s9 + $0x40] sm:$0xff]  ;;  %v178_v35 = vld [vmem:[%s5799_s9 + $0x48] sm:$0xff] }
  0x38   : > { %4829 = vmatmul.mubr.msk.f32.gmra.mrb[14].mxu1 %vm244_vm0, %v221_v36  ;;  %5053 = vmatmul.mubr.msk.f32.gmra.mrb[14].mxu0 %vm244_vm0, %v1820_v37  ;;  %v6084_v36 = vld [vmem:[%s5799_s9 + $0xec] sm:$0xff] }
  0x39   : > { %4831 = vmatprep.mubr.msk.f32.mxu1 %vm244_vm0, %v222_v38  ;;  %5055 = vmatprep.mubr.msk.f32.mxu0 %vm244_vm0, %v1821_v39  ;;  %v179_v37 = vld [vmem:[%s5799_s9 + $0x50] sm:$0xff]  ;;  %v180_v39 = vld [vmem:[%s5799_s9 + $0x58] sm:$0xff] }
  0x3a   : > { %v6088_v38 = vld [vmem:[%s5799_s9 + $0xf4] sm:$0xff] }
  0x3c   : > { %4832 = vmatmul.mubr.msk.f32.gmra.mrb[16].mxu1 %vm244_vm0, %v223_v40  ;;  %5056 = vmatmul.mubr.msk.f32.gmra.mrb[16].mxu0 %vm244_vm0, %v1822_v41  ;;  %v6098_v40 = vld [vmem:[%s5799_s9 + $0xfc] sm:$0xff] }
  0x3d   : > { %4834 = vmatprep.mubr.msk.f32.mxu1 %vm244_vm0, %v224_v42  ;;  %5087 = vmatprep.mubr.msk.f32.mxu0 %vm244_vm0, %v2232_v43  ;;  %v181_v41 = vld [vmem:[%s5799_s9 + $0x60] sm:$0xff]  ;;  %v182_v43 = vld [vmem:[%s5799_s9 + $0x68] sm:$0xff] }
  0x3e   : > { %v6102_v42 = vld [vmem:[%s5799_s9 + $0x104] sm:$0xff] }
  0x40   : > { %4835 = vmatmul.mubr.msk.f32.gmra.mrb[18].mxu1 %vm244_vm0, %v225_v44  ;;  %5088 = vmatmul.mubr.msk.f32.vlgmr.msra.gmra.mrb[0].mxu0 %vm244_vm0, %v2233_v45  ;;  %v6112_v44 = vld [vmem:[%s5799_s9 + $0x10c] sm:$0xff] }
  0x41   : > { %5142 = vmatpush3.msra.mxu0 %v5814_v10  ;;  %4837 = vmatprep.mubr.msk.f32.mxu1 %vm244_vm0, %v226_v46  ;;  %v239_v10 = vld [vmem:[%s5799_s9 + $0x109] sm:$0xff]  ;;  %v6116_v46 = vld [vmem:[%s5799_s9 + $0x114] sm:$0xff] }
  0x42   : > { %5090 = vmatprep.mubr.msk.f32.mxu0 %vm244_vm0, %v5893_v47  ;;  %5197 = vmatprep.subr.mxu0 %v5898_v48  ;;  %v183_v45 = vld [vmem:[%s5799_s9 + $0x70] sm:$0xff] }
  0x44   : > { %4838 = vmatmul.mubr.msk.f32.gmra.mrb[20].mxu1 %vm244_vm0, %v227_v49  ;;  %5091 = vmatmul.mubr.msk.f32.gmra.mrb[2].mxu0 %vm244_vm0, %v5906_v50  ;;  %v184_v49 = vld [vmem:[%s5799_s9 + $0x78] sm:$0xff] }
  0x45   : > { %4840 = vmatprep.mubr.msk.f32.mxu1 %vm244_vm0, %v228_v51  ;;  %5093 = vmatprep.mubr.msk.f32.mxu0 %vm244_vm0, %v5912_v52  ;;  %v6126_v51 = vld [vmem:[%s5799_s9 + $0x11c] sm:$0xff] }
  0x48   : > { %4841 = vmatmul.mubr.msk.f32.gmra.mrb[22].mxu1 %vm244_vm0, %v229_v53  ;;  %5094 = vmatmul.mubr.msk.f32.gmra.mrb[4].mxu0 %vm244_vm0, %v5923_v54  ;;  %v185_v53 = vld [vmem:[%s5799_s9 + $0x80] sm:$0xff] }
  0x49   : > { %4843 = vmatprep.mubr.msk.f32.mxu1 %vm244_vm0, %v230_v55  ;;  %5096 = vmatprep.mubr.msk.f32.mxu0 %vm244_vm0, %v5927_v56  ;;  %v6130_v55 = vld [vmem:[%s5799_s9 + $0x124] sm:$0xff] }
  0x4c   : > { %4844 = vmatmul.mubr.msk.f32.gmra.mrb[24].mxu1 %vm244_vm0, %v231_v57  ;;  %5097 = vmatmul.mubr.msk.f32.gmra.mrb[6].mxu0 %vm244_vm0, %v5937_v58  ;;  %v186_v57 = vld [vmem:[%s5799_s9 + $0x88] sm:$0xff] }
  0x4d   : > { %4846 = vmatprep.mubr.msk.f32.mxu1 %vm244_vm0, %v232_v59  ;;  %5099 = vmatprep.mubr.msk.f32.mxu0 %vm244_vm0, %v5941_v60  ;;  %v6140_v59 = vld [vmem:[%s5799_s9 + $0x12c] sm:$0xff] }
  0x50   : > { %4847 = vmatmul.mubr.msk.f32.gmra.mrb[26].mxu1 %vm244_vm0, %v233_v61  ;;  %5100 = vmatmul.mubr.msk.f32.gmra.mrb[8].mxu0 %vm244_vm0, %v5951_v62  ;;  %v187_v61 = vld [vmem:[%s5799_s9 + $0x90] sm:$0xff] }
  0x51   : > { %4849 = vmatprep.mubr.msk.f32.mxu1 %vm244_vm0, %v234_v63  ;;  %5102 = vmatprep.mubr.msk.f32.mxu0 %vm244_vm0, %v5955_v0  ;;  %v188_v63 = vld [vmem:[%s5799_s9 + $0x98] sm:$0xff] }
  0x54   : > { %4850 = vmatmul.mubr.msk.f32.gmra.mrb[28].mxu1 %vm244_vm0, %v235_v2  ;;  %5103 = vmatmul.mubr.msk.f32.gmra.mrb[10].mxu0 %vm244_vm0, %v5965_v3  ;;  %v189_v2 = vld [vmem:[%s5799_s9 + $0xa0] sm:$0xff] }
  0x55   : > { %4852 = vmatprep.mubr.msk.f32.mxu1 %vm244_vm0, %v236_v4  ;;  %5105 = vmatprep.mubr.msk.f32.mxu0 %vm244_vm0, %v5969_v5  ;;  %v6154_v4 = vld [vmem:[%s6843_s1 + $0x40] sm:$0xff] }
  0x58   : > { %4853 = vmatmul.mubr.msk.f32.gmra.mrb[30].mxu1 %vm244_vm0, %v237_v6  ;;  %5106 = vmatmul.mubr.msk.f32.gmra.mrb[12].mxu0 %vm244_vm0, %v5979_v7  ;;  %v191_v6 = vld [vmem:[%s5799_s9 + $0xb0] sm:$0xff] }
  0x59   : > { %4855 = vmatprep.mubr.msk.f32.mxu1 %vm244_vm0, %v238_v8  ;;  %5108 = vmatprep.mubr.msk.f32.mxu0 %vm244_vm0, %v5983_v9  ;;  %v204_v8 = vld [vmem:[%s5799_s9 + $0x118] sm:$0xff] }
  0x5c   : > { %4856 = vmatmul.mubr.msk.f32.gmra.mrb[32].mxu1 %vm244_vm0, %v239_v10  ;;  %5109 = vmatmul.mubr.msk.f32.gmra.mrb[14].mxu0 %vm244_vm0, %v5993_v12  ;;  %v952_v10 = vld [vmem:[%s5799_s9 + $0xa] sm:$0xff] }
  0x5d   : > { %4858 = vmatprep.mubr.msk.f32.mxu1 %vm244_vm0, %v240_v13  ;;  %5111 = vmatprep.mubr.msk.f32.mxu0 %vm244_vm0, %v5997_v14  ;;  %v6239_v13 = vld [vmem:[%s5799_s9 + $0x1a] sm:$0xff] }
  0x60   : > { %4859 = vmatmul.mubr.msk.f32.gmra.mrb[34].mxu1 %vm244_vm0, %v241_v15  ;;  %5112 = vmatmul.mubr.msk.f32.gmra.mrb[16].mxu0 %vm244_vm0, %v6007_v16  ;;  %v6256_v15 = vld [vmem:[%s5799_s9 + $0x2a] sm:$0xff] }
  0x61   : > { %4863 = vmatprep.mubr.msk.f32.mxu1 %vm244_vm0, %v169_v17  ;;  %5114 = vmatprep.mubr.msk.f32.mxu0 %vm244_vm0, %v6011_v18  ;;  %v6270_v17 = vld [vmem:[%s5799_s9 + $0x3a] sm:$0xff] }
  0x64   : > { %4864 = vmatmul.mubr.msk.f32.vlgmr.msra.gmra.mrb[0].mxu1 %vm244_vm0, %v170_v19  ;;  %5115 = vmatmul.mubr.msk.f32.gmra.mrb[18].mxu0 %vm244_vm0, %v6021_v20  ;;  %v6284_v19 = vld [vmem:[%s5799_s9 + $0x4a] sm:$0xff] }
  0x65   : > { %4918 = vmatpush3.msra.mxu1 %v5819_v11  ;;  %4866 = vmatprep.mubr.msk.f32.mxu1 %vm244_vm0, %v171_v21  ;;  %v174_v11 = vld [vmem:[%s5799_s9 + $0x28] sm:$0xff]  ;;  %v6298_v21 = vld [vmem:[%s5799_s9 + $0x5a] sm:$0xff] }
  0x66   : > { %5117 = vmatprep.mubr.msk.f32.mxu0 %vm244_vm0, %v6025_v22  ;;  %4973 = vmatprep.subr.mxu1 %v6030_v23 }
  0x68   : > { %4867 = vmatmul.mubr.msk.f32.gmra.mrb[2].mxu1 %vm244_vm0, %v172_v24  ;;  %5118 = vmatmul.mubr.msk.f32.gmra.mrb[20].mxu0 %vm244_vm0, %v6039_v25  ;;  %v6315_v24 = vld [vmem:[%s5799_s9 + $0x72] sm:$0xff] }
  0x69   : > { %4869 = vmatprep.mubr.msk.f32.mxu1 %vm244_vm0, %v173_v26  ;;  %5120 = vmatprep.mubr.msk.f32.mxu0 %vm244_vm0, %v6045_v27  ;;  %v6329_v26 = vld [vmem:[%s5799_s9 + $0x82] sm:$0xff] }
  0x6c   : > { %4870 = vmatmul.mubr.msk.f32.gmra.mrb[4].mxu1 %vm244_vm0, %v174_v11  ;;  %5121 = vmatmul.mubr.msk.f32.gmra.mrb[22].mxu0 %vm244_vm0, %v6056_v28  ;;  %v6340_v11 = vld [vmem:[%s5799_s9 + $0x8a] sm:$0xff] }
  0x6d   : > { %4872 = vmatprep.mubr.msk.f32.mxu1 %vm244_vm0, %v175_v29  ;;  %5123 = vmatprep.mubr.msk.f32.mxu0 %vm244_vm0, %v6060_v30  ;;  %v6344_v29 = vld [vmem:[%s5799_s9 + $0x92] sm:$0xff] }
  0x70   : > { %4873 = vmatmul.mubr.msk.f32.gmra.mrb[6].mxu1 %vm244_vm0, %v176_v31  ;;  %5124 = vmatmul.mubr.msk.f32.gmra.mrb[24].mxu0 %vm244_vm0, %v6070_v32  ;;  %v6354_v31 = vld [vmem:[%s5799_s9 + $0x9a] sm:$0xff] }
  0x71   : > { %4875 = vmatprep.mubr.msk.f32.mxu1 %vm244_vm0, %v177_v33  ;;  %5126 = vmatprep.mubr.msk.f32.mxu0 %vm244_vm0, %v6074_v34  ;;  %v6358_v33 = vld [vmem:[%s5799_s9 + $0xa2] sm:$0xff] }
  0x74   : > { %4876 = vmatmul.mubr.msk.f32.gmra.mrb[8].mxu1 %vm244_vm0, %v178_v35  ;;  %5127 = vmatmul.mubr.msk.f32.gmra.mrb[26].mxu0 %vm244_vm0, %v6084_v36  ;;  %v6368_v35 = vld [vmem:[%s5799_s9 + $0xaa] sm:$0xff] }
  0x75   : > { %4878 = vmatprep.mubr.msk.f32.mxu1 %vm244_vm0, %v179_v37  ;;  %5129 = vmatprep.mubr.msk.f32.mxu0 %vm244_vm0, %v6088_v38  ;;  %v6373_v37 = vld [vmem:[%s5799_s9 + $0xb2] sm:$0xff] }
  0x78   : > { %4879 = vmatmul.mubr.msk.f32.gmra.mrb[10].mxu1 %vm244_vm0, %v180_v39  ;;  %5130 = vmatmul.mubr.msk.f32.gmra.mrb[28].mxu0 %vm244_vm0, %v6098_v40  ;;  %v6383_v39 = vld [vmem:[%s5799_s9 + $0xba] sm:$0xff] }
  0x79   : > { %4881 = vmatprep.mubr.msk.f32.mxu1 %vm244_vm0, %v181_v41  ;;  %5132 = vmatprep.mubr.msk.f32.mxu0 %vm244_vm0, %v6102_v42  ;;  %v6387_v41 = vld [vmem:[%s5799_s9 + $0xc2] sm:$0xff] }
  0x7c   : > { %4882 = vmatmul.mubr.msk.f32.gmra.mrb[12].mxu1 %vm244_vm0, %v182_v43  ;;  %5133 = vmatmul.mubr.msk.f32.gmra.mrb[30].mxu0 %vm244_vm0, %v6112_v44  ;;  %v6397_v43 = vld [vmem:[%s5799_s9 + $0xca] sm:$0xff] }
  0x7d   : > { %4884 = vmatprep.mubr.msk.f32.mxu1 %vm244_vm0, %v183_v45  ;;  %5135 = vmatprep.mubr.msk.f32.mxu0 %vm244_vm0, %v6116_v46  ;;  %v6401_v45 = vld [vmem:[%s5799_s9 + $0xd2] sm:$0xff] }
  0x80   : > { %4885 = vmatmul.mubr.msk.f32.gmra.mrb[14].mxu1 %vm244_vm0, %v184_v49  ;;  %5136 = vmatmul.mubr.msk.f32.gmra.mrb[32].mxu0 %vm244_vm0, %v6126_v51  ;;  %v6411_v49 = vld [vmem:[%s5799_s9 + $0xda] sm:$0xff] }
  0x81   : > { %4887 = vmatprep.mubr.msk.f32.mxu1 %vm244_vm0, %v185_v53  ;;  %5138 = vmatprep.mubr.msk.f32.mxu0 %vm244_vm0, %v6130_v55  ;;  %v6415_v53 = vld [vmem:[%s5799_s9 + $0xe2] sm:$0xff] }
  0x84   : > { %4888 = vmatmul.mubr.msk.f32.gmra.mrb[16].mxu1 %vm244_vm0, %v186_v57  ;;  %5139 = vmatmul.mubr.msk.f32.gmra.mrb[34].mxu0 %vm244_vm0, %v6140_v59  ;;  %v6425_v57 = vld [vmem:[%s5799_s9 + $0xea] sm:$0xff] }
  0x85   : > { %4890 = vmatprep.mubr.msk.f32.mxu1 %vm244_vm0, %v187_v61  ;;  %5143 = vmatprep.mubr.msk.f32.mxu0 %vm244_vm0, %v5893_v47  ;;  %v190_v47 = vld [vmem:[%s5799_s9 + $0xa8] sm:$0xff]  ;;  %v6429_v61 = vld [vmem:[%s5799_s9 + $0xf2] sm:$0xff] }
  0x88   : > { %4891 = vmatmul.mubr.msk.f32.gmra.mrb[18].mxu1 %vm244_vm0, %v188_v63  ;;  %5144 = vmatmul.mubr.msk.f32.vlgmr.msra.gmra.mrb[0].mxu0 %vm244_vm0, %v5906_v50  ;;  %v193_v50 = vld [vmem:[%s5799_s9 + $0xc0] sm:$0xff] }
  0x89   : > { %5198 = vmatpush3.msra.mxu0 %v5898_v48  ;;  %4893 = vmatprep.mubr.msk.f32.mxu1 %vm244_vm0, %v189_v2  ;;  %v192_v48 = vld [vmem:[%s5799_s9 + $0xb8] sm:$0xff]  ;;  %v3098_v63 = vld [vmem:[%s5799_s9 + $0x85] sm:$0xff] }
  0x8a   : > { %5146 = vmatprep.mubr.msk.f32.mxu0 %vm244_vm0, %v5912_v52  ;;  %5253 = vmatprep.subr.mxu0 %v6154_v4  ;;  %v194_v52 = vld [vmem:[%s5799_s9 + $0xc8] sm:$0xff]  ;;  %v6439_v2 = vld [vmem:[%s5799_s9 + $0xfa] sm:$0xff] }
  0x8c   : > { %4894 = vmatmul.mubr.msk.f32.gmra.mrb[20].mxu1 %vm244_vm0, %v190_v47  ;;  %5147 = vmatmul.mubr.msk.f32.gmra.mrb[2].mxu0 %vm244_vm0, %v5923_v54  ;;  %v195_v54 = vld [vmem:[%s5799_s9 + $0xd0] sm:$0xff]  ;;  %v6443_v47 = vld [vmem:[%s5799_s9 + $0x102] sm:$0xff] }
  0x8d   : > { %4896 = vmatprep.mubr.msk.f32.mxu1 %vm244_vm0, %v191_v6  ;;  %5149 = vmatprep.mubr.msk.f32.mxu0 %vm244_vm0, %v5927_v56  ;;  %v196_v56 = vld [vmem:[%s5799_s9 + $0xd8] sm:$0xff] }
  0x8e   : > { %v3100_v6 = vld [vmem:[%s5799_s9 + $0x95] sm:$0xff] }
  0x90   : > { %4897 = vmatmul.mubr.msk.f32.gmra.mrb[22].mxu1 %vm244_vm0, %v192_v48  ;;  %5150 = vmatmul.mubr.msk.f32.gmra.mrb[4].mxu0 %vm244_vm0, %v5937_v58  ;;  %v197_v58 = vld [vmem:[%s5799_s9 + $0xe0] sm:$0xff]  ;;  %v6453_v48 = vld [vmem:[%s5799_s9 + $0x10a] sm:$0xff] }
  0x91   : > { %4899 = vmatprep.mubr.msk.f32.mxu1 %vm244_vm0, %v193_v50  ;;  %5152 = vmatprep.mubr.msk.f32.mxu0 %vm244_vm0, %v5941_v60  ;;  %v198_v60 = vld [vmem:[%s5799_s9 + $0xe8] sm:$0xff]  ;;  %v3101_v50 = vld [vmem:[%s5799_s9 + $0x9d] sm:$0xff] }
  0x94   : > { %4900 = vmatmul.mubr.msk.f32.gmra.mrb[24].mxu1 %vm244_vm0, %v194_v52  ;;  %5153 = vmatmul.mubr.msk.f32.gmra.mrb[6].mxu0 %vm244_vm0, %v5951_v62  ;;  %v199_v62 = vld [vmem:[%s5799_s9 + $0xf0] sm:$0xff] }
  0x95   : > { %4902 = vmatprep.mubr.msk.f32.mxu1 %vm244_vm0, %v195_v54  ;;  %5155 = vmatprep.mubr.msk.f32.mxu0 %vm244_vm0, %v5955_v0  ;;  %v200_v0 = vld [vmem:[%s5799_s9 + $0xf8] sm:$0xff]  ;;  %v3102_v54 = vld [vmem:[%s5799_s9 + $0xa5] sm:$0xff] }
  0x96   : > { %v6457_v52 = vld [vmem:[%s5799_s9 + $0x112] sm:$0xff] }
  0x98   : > { %4903 = vmatmul.mubr.msk.f32.gmra.mrb[26].mxu1 %vm244_vm0, %v196_v56  ;;  %5156 = vmatmul.mubr.msk.f32.gmra.mrb[8].mxu0 %vm244_vm0, %v5965_v3  ;;  %v201_v3 = vld [vmem:[%s5799_s9 + $0x100] sm:$0xff] }
  0x99   : > { %4905 = vmatprep.mubr.msk.f32.mxu1 %vm244_vm0, %v197_v58  ;;  %5158 = vmatprep.mubr.msk.f32.mxu0 %vm244_vm0, %v5969_v5  ;;  %v202_v5 = vld [vmem:[%s5799_s9 + $0x108] sm:$0xff]  ;;  %v6467_v56 = vld [vmem:[%s5799_s9 + $0x11a] sm:$0xff] }
  0x9a   : > { %v3103_v58 = vld [vmem:[%s5799_s9 + $0xad] sm:$0xff] }
  0x9c   : > { %4906 = vmatmul.mubr.msk.f32.gmra.mrb[28].mxu1 %vm244_vm0, %v198_v60  ;;  %5159 = vmatmul.mubr.msk.f32.gmra.mrb[10].mxu0 %vm244_vm0, %v5979_v7  ;;  %v203_v7 = vld [vmem:[%s5799_s9 + $0x110] sm:$0xff] }
  0x9d   : > { %4908 = vmatprep.mubr.msk.f32.mxu1 %vm244_vm0, %v199_v62  ;;  %5161 = vmatprep.mubr.msk.f32.mxu0 %vm244_vm0, %v5983_v9  ;;  %v951_v9 = vld [vmem:[%s5799_s9 + $0x2] sm:$0xff]  ;;  %v3104_v60 = vld [vmem:[%s5799_s9 + $0xb5] sm:$0xff] }
  0x9e   : > { %v3105_v62 = vld [vmem:[%s5799_s9 + $0xbd] sm:$0xff] }
  0xa0   : > { %4909 = vmatmul.mubr.msk.f32.gmra.mrb[30].mxu1 %vm244_vm0, %v200_v0  ;;  %5162 = vmatmul.mubr.msk.f32.gmra.mrb[12].mxu0 %vm244_vm0, %v5993_v12  ;;  %v6230_v12 = vld [vmem:[%s5799_s9 + $0x12] sm:$0xff]  ;;  %v3106_v0 = vld [vmem:[%s5799_s9 + $0xc5] sm:$0xff] }
  0xa1   : > { %4911 = vmatprep.mubr.msk.f32.mxu1 %vm244_vm0, %v201_v3  ;;  %5164 = vmatprep.mubr.msk.f32.mxu0 %vm244_vm0, %v5997_v14  ;;  %v6244_v14 = vld [vmem:[%s5799_s9 + $0x22] sm:$0xff]  ;;  %v3107_v3 = vld [vmem:[%s5799_s9 + $0xcd] sm:$0xff] }
  0xa4   : > { %4912 = vmatmul.mubr.msk.f32.gmra.mrb[32].mxu1 %vm244_vm0, %v202_v5  ;;  %5165 = vmatmul.mubr.msk.f32.gmra.mrb[14].mxu0 %vm244_vm0, %v6007_v16  ;;  %v6259_v16 = vld [vmem:[%s5799_s9 + $0x32] sm:$0xff] }
  0xa5   : > { %4914 = vmatprep.mubr.msk.f32.mxu1 %vm244_vm0, %v203_v7  ;;  %5167 = vmatprep.mubr.msk.f32.mxu0 %vm244_vm0, %v6011_v18  ;;  %v6273_v18 = vld [vmem:[%s5799_s9 + $0x42] sm:$0xff]  ;;  %v3108_v5 = vld [vmem:[%s5799_s9 + $0xd5] sm:$0xff] }
  0xa6   : > { %v3110_v7 = vld [vmem:[%s5799_s9 + $0xe5] sm:$0xff] }
  0xa8   : > { %4915 = vmatmul.mubr.msk.f32.gmra.mrb[34].mxu1 %vm244_vm0, %v204_v8  ;;  %5168 = vmatmul.mubr.msk.f32.gmra.mrb[16].mxu0 %vm244_vm0, %v6021_v20  ;;  %v6287_v20 = vld [vmem:[%s5799_s9 + $0x52] sm:$0xff] }
  0xa9   : > { %4919 = vmatprep.mubr.msk.f32.mxu1 %vm244_vm0, %v951_v9  ;;  %5170 = vmatprep.mubr.msk.f32.mxu0 %vm244_vm0, %v6025_v22  ;;  %v6301_v22 = vld [vmem:[%s5799_s9 + $0x62] sm:$0xff]  ;;  %v3111_v8 = vld [vmem:[%s5799_s9 + $0xed] sm:$0xff]  ;;  %v3112_v9 = vld [vmem:[%s5799_s9 + $0xf5] sm:$0xff] }
  0xac   : > { %4920 = vmatmul.mubr.msk.f32.vlgmr.msra.gmra.mrb[0].mxu1 %vm244_vm0, %v952_v10  ;;  %5171 = vmatmul.mubr.msk.f32.gmra.mrb[18].mxu0 %vm244_vm0, %v6039_v25  ;;  %v6326_v25 = vld [vmem:[%s5799_s9 + $0x7a] sm:$0xff] }
  0xad   : > { %4974 = vmatpush3.msra.mxu1 %v6030_v23  ;;  %4922 = vmatprep.mubr.msk.f32.mxu1 %vm244_vm0, %v6230_v12  ;;  %v6312_v23 = vld [vmem:[%s5799_s9 + $0x6a] sm:$0xff]  ;;  %v3113_v10 = vld [vmem:[%s5799_s9 + $0xfd] sm:$0xff] }
  0xae   : > { %5173 = vmatprep.mubr.msk.f32.mxu0 %vm244_vm0, %v6045_v27  ;;  %5309 = vmatprep.subr.mxu1 %v5784_v1  ;;  %v2693_v27 = vld [vmem:[%s5799_s9 + $0x134] sm:$0xff] }
  0xb0   : > { %4923 = vmatmul.mubr.msk.f32.gmra.mrb[2].mxu1 %vm244_vm0, %v6239_v13  ;;  %5174 = vmatmul.mubr.msk.f32.gmra.mrb[20].mxu0 %vm244_vm0, %v6056_v28  ;;  %v2694_v28 = vld [vmem:[%s5799_s9 + $0x13c] sm:$0xff] }
  0xb1   : > { %4925 = vmatprep.mubr.msk.f32.mxu1 %vm244_vm0, %v6244_v14  ;;  %5176 = vmatprep.mubr.msk.f32.mxu0 %vm244_vm0, %v6060_v30  ;;  %v3086_v30 = vld [vmem:[%s5799_s9 + $0x25] sm:$0xff] }
  0xb4   : > { %4926 = vmatmul.mubr.msk.f32.gmra.mrb[4].mxu1 %vm244_vm0, %v6256_v15  ;;  %5177 = vmatmul.mubr.msk.f32.gmra.mrb[22].mxu0 %vm244_vm0, %v6070_v32  ;;  %v3087_v32 = vld [vmem:[%s5799_s9 + $0x2d] sm:$0xff] }
  0xb5   : > { %4928 = vmatprep.mubr.msk.f32.mxu1 %vm244_vm0, %v6259_v16  ;;  %5179 = vmatprep.mubr.msk.f32.mxu0 %vm244_vm0, %v6074_v34  ;;  %v3088_v34 = vld [vmem:[%s5799_s9 + $0x35] sm:$0xff] }
  0xb8   : > { %4929 = vmatmul.mubr.msk.f32.gmra.mrb[6].mxu1 %vm244_vm0, %v6270_v17  ;;  %5180 = vmatmul.mubr.msk.f32.gmra.mrb[24].mxu0 %vm244_vm0, %v6084_v36  ;;  %v3089_v36 = vld [vmem:[%s5799_s9 + $0x3d] sm:$0xff] }
  0xb9   : > { %4931 = vmatprep.mubr.msk.f32.mxu1 %vm244_vm0, %v6273_v18  ;;  %5182 = vmatprep.mubr.msk.f32.mxu0 %vm244_vm0, %v6088_v38  ;;  %v3090_v38 = vld [vmem:[%s5799_s9 + $0x45] sm:$0xff] }
  0xbc   : > { %4932 = vmatmul.mubr.msk.f32.gmra.mrb[8].mxu1 %vm244_vm0, %v6284_v19  ;;  %5183 = vmatmul.mubr.msk.f32.gmra.mrb[26].mxu0 %vm244_vm0, %v6098_v40  ;;  %v3091_v40 = vld [vmem:[%s5799_s9 + $0x4d] sm:$0xff] }
  0xbd   : > { %4934 = vmatprep.mubr.msk.f32.mxu1 %vm244_vm0, %v6287_v20  ;;  %5185 = vmatprep.mubr.msk.f32.mxu0 %vm244_vm0, %v6102_v42  ;;  %v3092_v42 = vld [vmem:[%s5799_s9 + $0x55] sm:$0xff] }
  0xc0   : > { %4935 = vmatmul.mubr.msk.f32.gmra.mrb[10].mxu1 %vm244_vm0, %v6298_v21  ;;  %5186 = vmatmul.mubr.msk.f32.gmra.mrb[28].mxu0 %vm244_vm0, %v6112_v44  ;;  %v3093_v44 = vld [vmem:[%s5799_s9 + $0x5d] sm:$0xff] }
  0xc1   : > { %4937 = vmatprep.mubr.msk.f32.mxu1 %vm244_vm0, %v6301_v22  ;;  %5188 = vmatprep.mubr.msk.f32.mxu0 %vm244_vm0, %v6116_v46  ;;  %v3094_v46 = vld [vmem:[%s5799_s9 + $0x65] sm:$0xff] }
  0xc4   : > { %4938 = vmatmul.mubr.msk.f32.gmra.mrb[12].mxu1 %vm244_vm0, %v6312_v23  ;;  %5189 = vmatmul.mubr.msk.f32.gmra.mrb[30].mxu0 %vm244_vm0, %v6126_v51  ;;  %v3095_v51 = vld [vmem:[%s5799_s9 + $0x6d] sm:$0xff] }
  0xc5   : > { %4940 = vmatprep.mubr.msk.f32.mxu1 %vm244_vm0, %v6315_v24  ;;  %5191 = vmatprep.mubr.msk.f32.mxu0 %vm244_vm0, %v6130_v55  ;;  %v3096_v55 = vld [vmem:[%s5799_s9 + $0x75] sm:$0xff] }
  0xc8   : > { %4941 = vmatmul.mubr.msk.f32.gmra.mrb[14].mxu1 %vm244_vm0, %v6326_v25  ;;  %5192 = vmatmul.mubr.msk.f32.gmra.mrb[32].mxu0 %vm244_vm0, %v6140_v59  ;;  %v3097_v59 = vld [vmem:[%s5799_s9 + $0x7d] sm:$0xff] }
  0xc9   : > { %4943 = vmatprep.mubr.msk.f32.mxu1 %vm244_vm0, %v6329_v26  ;;  %5194 = vmatprep.mubr.msk.f32.mxu0 %vm244_vm0, %v2693_v27  ;;  %v3520_v27 = vld [vmem:[%s5799_s9 + $0x5e] sm:$0xff] }
  0xcc   : > { %4944 = vmatmul.mubr.msk.f32.gmra.mrb[16].mxu1 %vm244_vm0, %v6340_v11  ;;  %5195 = vmatmul.mubr.msk.f32.gmra.mrb[34].mxu0 %vm244_vm0, %v2694_v28  ;;  %v3522_v28 = vld [vmem:[%s5799_s9 + $0x6e] sm:$0xff] }
  0xcd   : > { %4946 = vmatprep.mubr.msk.f32.mxu1 %vm244_vm0, %v6344_v29  ;;  %5199 = vmatprep.mubr.msk.f32.mxu0 %vm244_vm0, %v3086_v30  ;;  %v3524_v30 = vld [vmem:[%s5799_s9 + $0x7e] sm:$0xff] }
  0xd0   : > { %4947 = vmatmul.mubr.msk.f32.gmra.mrb[18].mxu1 %vm244_vm0, %v6354_v31  ;;  %5200 = vmatmul.mubr.msk.f32.vlgmr.msra.gmra.mrb[0].mxu0 %vm244_vm0, %v3087_v32  ;;  %v3526_v32 = vld [vmem:[%s5799_s9 + $0x8e] sm:$0xff] }
  0xd1   : > { %5254 = vmatpush3.msra.mxu0 %v6154_v4  ;;  %4949 = vmatprep.mubr.msk.f32.mxu1 %vm244_vm0, %v6358_v33  ;;  %v3099_v4 = vld [vmem:[%s5799_s9 + $0x8d] sm:$0xff] }
  0xd2   : > { %5202 = vmatprep.mubr.msk.f32.mxu0 %vm244_vm0, %v3088_v34  ;;  %v3528_v34 = vld [vmem:[%s5799_s9 + $0x9e] sm:$0xff] }
  0xd4   : > { %4950 = vmatmul.mubr.msk.f32.gmra.mrb[20].mxu1 %vm244_vm0, %v6368_v35  ;;  %5203 = vmatmul.mubr.msk.f32.gmra.mrb[2].mxu0 %vm244_vm0, %v3089_v36  ;;  %v3529_v36 = vld [vmem:[%s5799_s9 + $0xa6] sm:$0xff] }
  0xd5   : > { %4952 = vmatprep.mubr.msk.f32.mxu1 %vm244_vm0, %v6373_v37  ;;  %5205 = vmatprep.mubr.msk.f32.mxu0 %vm244_vm0, %v3090_v38  ;;  %v3530_v38 = vld [vmem:[%s5799_s9 + $0xae] sm:$0xff] }
  0xd8   : > { %4953 = vmatmul.mubr.msk.f32.gmra.mrb[22].mxu1 %vm244_vm0, %v6383_v39  ;;  %5206 = vmatmul.mubr.msk.f32.gmra.mrb[4].mxu0 %vm244_vm0, %v3091_v40  ;;  %v3531_v40 = vld [vmem:[%s5799_s9 + $0xb6] sm:$0xff] }
  0xd9   : > { %4955 = vmatprep.mubr.msk.f32.mxu1 %vm244_vm0, %v6387_v41  ;;  %5208 = vmatprep.mubr.msk.f32.mxu0 %vm244_vm0, %v3092_v42  ;;  %v3532_v42 = vld [vmem:[%s5799_s9 + $0xbe] sm:$0xff] }
  0xdc   : > { %4956 = vmatmul.mubr.msk.f32.gmra.mrb[24].mxu1 %vm244_vm0, %v6397_v43  ;;  %5209 = vmatmul.mubr.msk.f32.gmra.mrb[6].mxu0 %vm244_vm0, %v3093_v44  ;;  %v3533_v44 = vld [vmem:[%s5799_s9 + $0xc6] sm:$0xff] }
  0xdd   : > { %4958 = vmatprep.mubr.msk.f32.mxu1 %vm244_vm0, %v6401_v45  ;;  %5211 = vmatprep.mubr.msk.f32.mxu0 %vm244_vm0, %v3094_v46  ;;  %v3534_v46 = vld [vmem:[%s5799_s9 + $0xce] sm:$0xff] }
  0xe0   : > { %4959 = vmatmul.mubr.msk.f32.gmra.mrb[26].mxu1 %vm244_vm0, %v6411_v49  ;;  %5212 = vmatmul.mubr.msk.f32.gmra.mrb[8].mxu0 %vm244_vm0, %v3095_v51  ;;  %v3535_v51 = vld [vmem:[%s5799_s9 + $0xd6] sm:$0xff] }
  0xe1   : > { %4961 = vmatprep.mubr.msk.f32.mxu1 %vm244_vm0, %v6415_v53  ;;  %5214 = vmatprep.mubr.msk.f32.mxu0 %vm244_vm0, %v3096_v55  ;;  %v3536_v55 = vld [vmem:[%s5799_s9 + $0xde] sm:$0xff] }
  0xe4   : > { %4962 = vmatmul.mubr.msk.f32.gmra.mrb[28].mxu1 %vm244_vm0, %v6425_v57  ;;  %5215 = vmatmul.mubr.msk.f32.gmra.mrb[10].mxu0 %vm244_vm0, %v3097_v59  ;;  %v3537_v59 = vld [vmem:[%s5799_s9 + $0xe6] sm:$0xff] }
  0xe5   : > { %4964 = vmatprep.mubr.msk.f32.mxu1 %vm244_vm0, %v6429_v61  ;;  %5217 = vmatprep.mubr.msk.f32.mxu0 %vm244_vm0, %v3098_v63  ;;  %v3538_v63 = vld [vmem:[%s5799_s9 + $0xee] sm:$0xff] }
  0xe8   : > { %4965 = vmatmul.mubr.msk.f32.gmra.mrb[30].mxu1 %vm244_vm0, %v6439_v2  ;;  %5218 = vmatmul.mubr.msk.f32.gmra.mrb[12].mxu0 %vm244_vm0, %v3099_v4  ;;  %v3539_v4 = vld [vmem:[%s5799_s9 + $0xf6] sm:$0xff] }
  0xe9   : > { %4967 = vmatprep.mubr.msk.f32.mxu1 %vm244_vm0, %v6443_v47  ;;  %5220 = vmatprep.mubr.msk.f32.mxu0 %vm244_vm0, %v3100_v6  ;;  %v3540_v6 = vld [vmem:[%s5799_s9 + $0xfe] sm:$0xff] }
  0xec   : > { %4968 = vmatmul.mubr.msk.f32.gmra.mrb[32].mxu1 %vm244_vm0, %v6453_v48  ;;  %5221 = vmatmul.mubr.msk.f32.gmra.mrb[14].mxu0 %vm244_vm0, %v3101_v50  ;;  %v3541_v50 = vld [vmem:[%s5799_s9 + $0x106] sm:$0xff] }
  0xed   : > { %4970 = vmatprep.mubr.msk.f32.mxu1 %vm244_vm0, %v6457_v52  ;;  %5223 = vmatprep.mubr.msk.f32.mxu0 %vm244_vm0, %v3102_v54  ;;  %v3542_v54 = vld [vmem:[%s5799_s9 + $0x10e] sm:$0xff] }
  0xf0   : > { %4971 = vmatmul.mubr.msk.f32.gmra.mrb[34].mxu1 %vm244_vm0, %v6467_v56  ;;  %5224 = vmatmul.mubr.msk.f32.gmra.mrb[16].mxu0 %vm244_vm0, %v3103_v58  ;;  %v3543_v58 = vld [vmem:[%s5799_s9 + $0x116] sm:$0xff] }
  0xf1   : > { %4975 = vmatprep.mubr.msk.f32.mxu1 %vm244_vm0, %v6230_v12  ;;  %5226 = vmatprep.mubr.msk.f32.mxu0 %vm244_vm0, %v3104_v60  ;;  %v3114_v12 = vld [vmem:[%s5799_s9 + $0x105] sm:$0xff] }
  0xf2   : > { %v1836_v60 = vld [vmem:[%s5799_s9 + $0x10b] sm:$0xff] }
  0xf4   : > { %4976 = vmatmul.mubr.msk.f32.vlgmr.msra.gmra.mrb[0].mxu1 %vm244_vm0, %v6239_v13  ;;  %5227 = vmatmul.mubr.msk.f32.gmra.mrb[18].mxu0 %vm244_vm0, %v3105_v62  ;;  %v3115_v13 = vld [vmem:[%s5799_s9 + $0x10d] sm:$0xff]  ;;  %v3544_v62 = vld [vmem:[%s5799_s9 + $0x11e] sm:$0xff] }
  0xf5   : > { %5310 = vmatpush3.msra.mxu1 %v5784_v1  ;;  %4978 = vmatprep.mubr.msk.f32.mxu1 %vm244_vm0, %v6244_v14  ;;  %v3109_v1 = vld [vmem:[%s5799_s9 + $0xdd] sm:$0xff]  ;;  %v3116_v14 = vld [vmem:[%s5799_s9 + $0x115] sm:$0xff] }
  0xf6   : > { %5229 = vmatprep.mubr.msk.f32.mxu0 %vm244_vm0, %v3106_v0  ;;  %v1837_v0 = vld [vmem:[%s5799_s9 + $0x113] sm:$0xff] }
  0xf8   : > { %4979 = vmatmul.mubr.msk.f32.gmra.mrb[2].mxu1 %vm244_vm0, %v6256_v15  ;;  %5230 = vmatmul.mubr.msk.f32.gmra.mrb[20].mxu0 %vm244_vm0, %v3107_v3  ;;  %v3117_v15 = vld [vmem:[%s5799_s9 + $0x11d] sm:$0xff]  ;;  %v3545_v3 = vld [vmem:[%s5799_s9 + $0x126] sm:$0xff] }
  0xf9   : > { %4981 = vmatprep.mubr.msk.f32.mxu1 %vm244_vm0, %v6259_v16  ;;  %5232 = vmatprep.mubr.msk.f32.mxu0 %vm244_vm0, %v3108_v5  ;;  %v3118_v16 = vld [vmem:[%s5799_s9 + $0x125] sm:$0xff]  ;;  %v1838_v5 = vld [vmem:[%s5799_s9 + $0x11b] sm:$0xff] }
  0xfc   : > { %4982 = vmatmul.mubr.msk.f32.gmra.mrb[4].mxu1 %vm244_vm0, %v6270_v17  ;;  %5233 = vmatmul.mubr.msk.f32.gmra.mrb[22].mxu0 %vm244_vm0, %v3109_v1  ;;  %v3119_v17 = vld [vmem:[%s5799_s9 + $0x12d] sm:$0xff] }
  0xfd   : > { %4984 = vmatprep.mubr.msk.f32.mxu1 %vm244_vm0, %v6273_v18  ;;  %5235 = vmatprep.mubr.msk.f32.mxu0 %vm244_vm0, %v3110_v7  ;;  %v3120_v18 = vld [vmem:[%s5799_s9 + $0x135] sm:$0xff]  ;;  %v1839_v7 = vld [vmem:[%s5799_s9 + $0x123] sm:$0xff] }
  0xfe   : > { %v3546_v1 = vld [vmem:[%s5799_s9 + $0x12e] sm:$0xff] }
 0x100   : > { %4985 = vmatmul.mubr.msk.f32.gmra.mrb[6].mxu1 %vm244_vm0, %v6284_v19  ;;  %5236 = vmatmul.mubr.msk.f32.gmra.mrb[24].mxu0 %vm244_vm0, %v3111_v8  ;;  %v3121_v19 = vld [vmem:[%s5799_s9 + $0x13d] sm:$0xff] }
 0x101   : > { %4987 = vmatprep.mubr.msk.f32.mxu1 %vm244_vm0, %v6287_v20  ;;  %5238 = vmatprep.mubr.msk.f32.mxu0 %vm244_vm0, %v3112_v9  ;;  %v3513_v20 = vld [vmem:[%s5799_s9 + $0x26] sm:$0xff]  ;;  %v3547_v8 = vld [vmem:[%s5799_s9 + $0x136] sm:$0xff] }
 0x102   : > { %v1840_v9 = vld [vmem:[%s5799_s9 + $0x12b] sm:$0xff] }
 0x104   : > { %4988 = vmatmul.mubr.msk.f32.gmra.mrb[8].mxu1 %vm244_vm0, %v6298_v21  ;;  %5239 = vmatmul.mubr.msk.f32.gmra.mrb[26].mxu0 %vm244_vm0, %v3113_v10  ;;  %v3514_v21 = vld [vmem:[%s5799_s9 + $0x2e] sm:$0xff]  ;;  %v3548_v10 = vld [vmem:[%s5799_s9 + $0x13e] sm:$0xff] }
 0x105   : > { %4990 = vmatprep.mubr.msk.f32.mxu1 %vm244_vm0, %v6301_v22  ;;  %5241 = vmatprep.mubr.msk.f32.mxu0 %vm244_vm0, %v3114_v12  ;;  %v3515_v22 = vld [vmem:[%s5799_s9 + $0x36] sm:$0xff] }
 0x108   : > { %4991 = vmatmul.mubr.msk.f32.gmra.mrb[10].mxu1 %vm244_vm0, %v6312_v23  ;;  %5242 = vmatmul.mubr.msk.f32.gmra.mrb[28].mxu0 %vm244_vm0, %v3115_v13  ;;  %v3516_v23 = vld [vmem:[%s5799_s9 + $0x3e] sm:$0xff] }
 0x109   : > { %4993 = vmatprep.mubr.msk.f32.mxu1 %vm244_vm0, %v6315_v24  ;;  %5244 = vmatprep.mubr.msk.f32.mxu0 %vm244_vm0, %v3116_v14  ;;  %v3517_v24 = vld [vmem:[%s5799_s9 + $0x46] sm:$0xff] }
 0x10c   : > { %4994 = vmatmul.mubr.msk.f32.gmra.mrb[12].mxu1 %vm244_vm0, %v6326_v25  ;;  %5245 = vmatmul.mubr.msk.f32.gmra.mrb[30].mxu0 %vm244_vm0, %v3117_v15  ;;  %v3518_v25 = vld [vmem:[%s5799_s9 + $0x4e] sm:$0xff] }
 0x10d   : > { %4996 = vmatprep.mubr.msk.f32.mxu1 %vm244_vm0, %v6329_v26  ;;  %5247 = vmatprep.mubr.msk.f32.mxu0 %vm244_vm0, %v3118_v16  ;;  %v3519_v26 = vld [vmem:[%s5799_s9 + $0x56] sm:$0xff] }
 0x110   : > { %4997 = vmatmul.mubr.msk.f32.gmra.mrb[14].mxu1 %vm244_vm0, %v6340_v11  ;;  %5248 = vmatmul.mubr.msk.f32.gmra.mrb[32].mxu0 %vm244_vm0, %v3119_v17  ;;  %v3521_v11 = vld [vmem:[%s5799_s9 + $0x66] sm:$0xff] }
 0x111   : > { %4999 = vmatprep.mubr.msk.f32.mxu1 %vm244_vm0, %v6344_v29  ;;  %5250 = vmatprep.mubr.msk.f32.mxu0 %vm244_vm0, %v3120_v18  ;;  %v3523_v29 = vld [vmem:[%s5799_s9 + $0x76] sm:$0xff] }
 0x114   : > { %5000 = vmatmul.mubr.msk.f32.gmra.mrb[16].mxu1 %vm244_vm0, %v6354_v31  ;;  %5251 = vmatmul.mubr.msk.f32.gmra.mrb[34].mxu0 %vm244_vm0, %v3121_v19  ;;  %v3525_v31 = vld [vmem:[%s5799_s9 + $0x86] sm:$0xff] }
 0x115   : > { %5002 = vmatprep.mubr.msk.f32.mxu1 %vm244_vm0, %v6358_v33  ;;  %5255 = vmatprep.mubr.msk.f32.mxu0 %vm244_vm0, %v3513_v20  ;;  %v3527_v33 = vld [vmem:[%s5799_s9 + $0x96] sm:$0xff] }
 0x118   : > { %5003 = vmatmul.mubr.msk.f32.gmra.mrb[18].mxu1 %vm244_vm0, %v6368_v35  ;;  %5256 = vmatmul.mubr.msk.f32.vlgmr.msra.gmra.mrb[0].mxu0 %vm244_vm0, %v3514_v21  ;;  %v1412_v35 = vld [vmem:[%s5799_s9 + $0x122] sm:$0xff] }
 0x119   : > { %5005 = vmatprep.mubr.msk.f32.mxu1 %vm244_vm0, %v6373_v37  ;;  %5258 = vmatprep.mubr.msk.f32.mxu0 %vm244_vm0, %v3515_v22  ;;  %v1413_v37 = vld [vmem:[%s5799_s9 + $0x12a] sm:$0xff] }
 0x11c   : > { %5006 = vmatmul.mubr.msk.f32.gmra.mrb[20].mxu1 %vm244_vm0, %v6383_v39  ;;  %5259 = vmatmul.mubr.msk.f32.gmra.mrb[2].mxu0 %vm244_vm0, %v3516_v23  ;;  %v1823_v39 = vld [vmem:[%s5799_s9 + $0xa3] sm:$0xff] }
 0x11d   : > { %5008 = vmatprep.mubr.msk.f32.mxu1 %vm244_vm0, %v6387_v41  ;;  %5261 = vmatprep.mubr.msk.f32.mxu0 %vm244_vm0, %v3517_v24  ;;  %v1824_v41 = vld [vmem:[%s5799_s9 + $0xab] sm:$0xff] }
 0x120   : > { %5009 = vmatmul.mubr.msk.f32.gmra.mrb[22].mxu1 %vm244_vm0, %v6397_v43  ;;  %5262 = vmatmul.mubr.msk.f32.gmra.mrb[4].mxu0 %vm244_vm0, %v3518_v25  ;;  %v1825_v43 = vld [vmem:[%s5799_s9 + $0xb3] sm:$0xff] }
 0x121   : > { %5011 = vmatprep.mubr.msk.f32.mxu1 %vm244_vm0, %v6401_v45  ;;  %5264 = vmatprep.mubr.msk.f32.mxu0 %vm244_vm0, %v3519_v26  ;;  %v1826_v45 = vld [vmem:[%s5799_s9 + $0xbb] sm:$0xff] }
 0x124   : > { %5012 = vmatmul.mubr.msk.f32.gmra.mrb[24].mxu1 %vm244_vm0, %v6411_v49  ;;  %5265 = vmatmul.mubr.msk.f32.gmra.mrb[6].mxu0 %vm244_vm0, %v3520_v27  ;;  %v1827_v49 = vld [vmem:[%s5799_s9 + $0xc3] sm:$0xff] }
 0x125   : > { %5014 = vmatprep.mubr.msk.f32.mxu1 %vm244_vm0, %v6415_v53  ;;  %5267 = vmatprep.mubr.msk.f32.mxu0 %vm244_vm0, %v3521_v11  ;;  %v1828_v53 = vld [vmem:[%s5799_s9 + $0xcb] sm:$0xff] }
 0x128   : > { %5015 = vmatmul.mubr.msk.f32.gmra.mrb[26].mxu1 %vm244_vm0, %v6425_v57  ;;  %5268 = vmatmul.mubr.msk.f32.gmra.mrb[8].mxu0 %vm244_vm0, %v3522_v28  ;;  %v1829_v57 = vld [vmem:[%s5799_s9 + $0xd3] sm:$0xff] }
 0x129   : > { %5017 = vmatprep.mubr.msk.f32.mxu1 %vm244_vm0, %v6429_v61  ;;  %5270 = vmatprep.mubr.msk.f32.mxu0 %vm244_vm0, %v3523_v29  ;;  %v1830_v61 = vld [vmem:[%s5799_s9 + $0xdb] sm:$0xff] }
 0x12c   : > { %5018 = vmatmul.mubr.msk.f32.gmra.mrb[28].mxu1 %vm244_vm0, %v6439_v2  ;;  %5271 = vmatmul.mubr.msk.f32.gmra.mrb[10].mxu0 %vm244_vm0, %v3524_v30  ;;  %v1831_v2 = vld [vmem:[%s5799_s9 + $0xe3] sm:$0xff]  ;;  %v6708_v30 = vld [vmem:[%s6844_s2] ss:$0 sm:$0xff] }
 0x12d   : > { %5020 = vmatprep.mubr.msk.f32.mxu1 %vm244_vm0, %v6443_v47  ;;  %5273 = vmatprep.mubr.msk.f32.mxu0 %vm244_vm0, %v3525_v31  ;;  %v1832_v47 = vld [vmem:[%s5799_s9 + $0xeb] sm:$0xff] }
 0x130   : > { %5021 = vmatmul.mubr.msk.f32.gmra.mrb[30].mxu1 %vm244_vm0, %v6453_v48  ;;  %5274 = vmatmul.mubr.msk.f32.gmra.mrb[12].mxu0 %vm244_vm0, %v3526_v32  ;;  %v1833_v48 = vld [vmem:[%s5799_s9 + $0xf3] sm:$0xff] }
 0x131   : > { %5023 = vmatprep.mubr.msk.f32.mxu1 %vm244_vm0, %v6457_v52  ;;  %5276 = vmatprep.mubr.msk.f32.mxu0 %vm244_vm0, %v3527_v33  ;;  %v1834_v52 = vld [vmem:[%s5799_s9 + $0xfb] sm:$0xff] }
 0x134   : > { %5024 = vmatmul.mubr.msk.f32.gmra.mrb[32].mxu1 %vm244_vm0, %v6467_v56  ;;  %5277 = vmatmul.mubr.msk.f32.gmra.mrb[14].mxu0 %vm244_vm0, %v3528_v34  ;;  %v1835_v56 = vld [vmem:[%s5799_s9 + $0x103] sm:$0xff] }
 0x135   : > { %5026 = vmatprep.mubr.msk.f32.mxu1 %vm244_vm0, %v1412_v35  ;;  %5279 = vmatprep.mubr.msk.f32.mxu0 %vm244_vm0, %v3529_v36 }
 0x138   : > { %5027 = vmatmul.mubr.msk.f32.gmra.mrb[34].mxu1 %vm244_vm0, %v1413_v37  ;;  %5280 = vmatmul.mubr.msk.f32.gmra.mrb[16].mxu0 %vm244_vm0, %v3530_v38 }
 0x139   : > { %5058 = vmatprep.mubr.msk.f32.mxu1 %vm244_vm0, %v1823_v39  ;;  %5282 = vmatprep.mubr.msk.f32.mxu0 %vm244_vm0, %v3531_v40 }
 0x13c   : > { %5059 = vmatmul.mubr.msk.f32.vlgmr.msra.gmra.mrb[18].mxu1 %vm244_vm0, %v1824_v41  ;;  %5283 = vmatmul.mubr.msk.f32.gmra.mrb[18].mxu0 %vm244_vm0, %v3532_v42 }
 0x13d   : > { %5061 = vmatprep.mubr.msk.f32.mxu1 %vm244_vm0, %v1825_v43  ;;  %5285 = vmatprep.mubr.msk.f32.mxu0 %vm244_vm0, %v3533_v44 }
 0x140   : > { %5062 = vmatmul.mubr.msk.f32.gmra.mrb[20].mxu1 %vm244_vm0, %v1826_v45  ;;  %5286 = vmatmul.mubr.msk.f32.gmra.mrb[20].mxu0 %vm244_vm0, %v3534_v46 }
 0x141   : > { %5064 = vmatprep.mubr.msk.f32.mxu1 %vm244_vm0, %v1827_v49  ;;  %5288 = vmatprep.mubr.msk.f32.mxu0 %vm244_vm0, %v3535_v51 }
 0x144   : > { %5065 = vmatmul.mubr.msk.f32.gmra.mrb[22].mxu1 %vm244_vm0, %v1828_v53  ;;  %5289 = vmatmul.mubr.msk.f32.gmra.mrb[22].mxu0 %vm244_vm0, %v3536_v55 }
 0x145   : > { %5067 = vmatprep.mubr.msk.f32.mxu1 %vm244_vm0, %v1829_v57  ;;  %5291 = vmatprep.mubr.msk.f32.mxu0 %vm244_vm0, %v3537_v59 }
 0x148   : > { %5068 = vmatmul.mubr.msk.f32.gmra.mrb[24].mxu1 %vm244_vm0, %v1830_v61  ;;  %5292 = vmatmul.mubr.msk.f32.gmra.mrb[24].mxu0 %vm244_vm0, %v3538_v63 }
 0x149   : > { %5070 = vmatprep.mubr.msk.f32.mxu1 %vm244_vm0, %v1831_v2  ;;  %5294 = vmatprep.mubr.msk.f32.mxu0 %vm244_vm0, %v3539_v4 }
 0x14c   : > { %5071 = vmatmul.mubr.msk.f32.gmra.mrb[26].mxu1 %vm244_vm0, %v1832_v47  ;;  %5295 = vmatmul.mubr.msk.f32.gmra.mrb[26].mxu0 %vm244_vm0, %v3540_v6 }
 0x14d   : > { %5073 = vmatprep.mubr.msk.f32.mxu1 %vm244_vm0, %v1833_v48  ;;  %5297 = vmatprep.mubr.msk.f32.mxu0 %vm244_vm0, %v3541_v50 }
 0x150   : > { %5074 = vmatmul.mubr.msk.f32.gmra.mrb[28].mxu1 %vm244_vm0, %v1834_v52  ;;  %5298 = vmatmul.mubr.msk.f32.gmra.mrb[28].mxu0 %vm244_vm0, %v3542_v54 }
 0x151   : > { %5076 = vmatprep.mubr.msk.f32.mxu1 %vm244_vm0, %v1835_v56  ;;  %5300 = vmatprep.mubr.msk.f32.mxu0 %vm244_vm0, %v3543_v58 }
 0x154   : > { %5077 = vmatmul.mubr.msk.f32.gmra.mrb[30].mxu1 %vm244_vm0, %v1836_v60  ;;  %5301 = vmatmul.mubr.msk.f32.gmra.mrb[30].mxu0 %vm244_vm0, %v3544_v62 }
 0x155   : > { %5079 = vmatprep.mubr.msk.f32.mxu1 %vm244_vm0, %v1837_v0  ;;  %5303 = vmatprep.mubr.msk.f32.mxu0 %vm244_vm0, %v3545_v3 }
 0x158   : > { %5080 = vmatmul.mubr.msk.f32.gmra.mrb[32].mxu1 %vm244_vm0, %v1838_v5  ;;  %5304 = vmatmul.mubr.msk.f32.gmra.mrb[32].mxu0 %vm244_vm0, %v3546_v1 }
 0x159   : > { %5082 = vmatprep.mubr.msk.f32.mxu1 %vm244_vm0, %v1839_v7  ;;  %5306 = vmatprep.mubr.msk.f32.mxu0 %vm244_vm0, %v3547_v8 }
 0x15c   : > { %5083 = vmatmul.mubr.msk.f32.gmra.mrb[34].mxu1 %vm244_vm0, %v1840_v9  ;;  %5307 = vmatmul.mubr.msk.f32.gmra.mrb[34].mxu0 %vm244_vm0, %v3548_v10 }
 0x1c7   : > { %v4977_v12 = vpop.f32.mrb[0].mxu1 }
 0x1c8   : > { %v1590_v13 = vpop.f32.mrb[1].mxu1 }
 0x1cb   : > { %v4980_v14 = vpop.f32.mrb[2].mxu1 }
 0x1cc   : > { %v1600_v15 = vpop.f32.mrb[3].mxu1 }
 0x1cf   : > { %v4983_v16 = vpop.f32.mrb[4].mxu1 }
 0x1d0   : > { %v1610_v17 = vpop.f32.mrb[5].mxu1 }
 0x1d3   : > { %v4986_v18 = vpop.f32.mrb[6].mxu1 }
 0x1d4   : > { %v1620_v19 = vpop.f32.mrb[7].mxu1 }
 0x1d7   : > { %v4989_v20 = vpop.f32.mrb[8].mxu1 }
 0x1d8   : > { %v1630_v21 = vpop.f32.mrb[9].mxu1 }
 0x1db   : > { %v4992_v22 = vpop.f32.mrb[10].mxu1 }
 0x1dc   : > { %v1640_v23 = vpop.f32.mrb[11].mxu1 }
 0x1df   : > { %v6690_v24 = vpop.f32.mrb[12].mxu1 }
 0x1e0   : > { %v6692_v25 = vpop.f32.mrb[13].mxu1 }
 0x1e3   : > { %v6694_v26 = vpop.f32.mrb[14].mxu1 }
 0x1e4   : > { %v6696_v27 = vpop.f32.mrb[15].mxu1 }
 0x1e7   : > { %v6698_v11 = vpop.f32.mrb[16].mxu1 }
 0x1e8   : > { %v6700_v28 = vpop.f32.mrb[17].mxu1 }
 0x1eb   : > { %v5257_v29 = vpop.f32.mrb[0].mxu0 }
 0x1ec   : > { %v5311_v31 = vadd.f32 %v5257_v29, %v4977_v12  ;;  %v3725_v32 = vpop.f32.mrb[1].mxu0 }
 0x1ed   : > { %v5312_v33 = vadd.f32 %v3725_v32, %v1590_v13 }
 0x1ee   : > { %v3948_v34 = vadd.f32 %v5311_v31, %v6708_v30 }
 0x1ef   : > { %v3947_v35 = vadd.f32 %v5312_v33, %v6708_v30  ;;  %v5260_v36 = vpop.f32.mrb[2].mxu0 }
 0x1f0   : > { %v3984_v37 = vmax.f32 %v3948_v34, 0.0  ;;  %v5313_v38 = vadd.f32 %v5260_v36, %v4980_v14  ;;  %v3735_v39 = vpop.f32.mrb[3].mxu0 }
 0x1f1   : > { %v3983_v40 = vmax.f32 %v3947_v35, 0.0  ;;  %v5314_v41 = vadd.f32 %v3735_v39, %v1600_v15 }
 0x1f2   : > { %4020 = vst [vmem:[%s6712_s6 + $0x8] sm:$0xff] %v3984_v37  ;;  %v3950_v42 = vadd.f32 %v5313_v38, %v6708_v30 }
 0x1f3   : > { %4019 = vst [vmem:[%s6712_s6] sm:$0xff] %v3983_v40  ;;  %v3949_v43 = vadd.f32 %v5314_v41, %v6708_v30  ;;  %v5263_v44 = vpop.f32.mrb[4].mxu0 }
 0x1f4   : > { %v3986_v45 = vmax.f32 %v3950_v42, 0.0  ;;  %v5315_v46 = vadd.f32 %v5263_v44, %v4983_v16  ;;  %v3745_v49 = vpop.f32.mrb[5].mxu0 }
 0x1f5   : > { %v3985_v51 = vmax.f32 %v3949_v43, 0.0  ;;  %v5316_v53 = vadd.f32 %v3745_v49, %v1610_v17 }
 0x1f6   : > { %4022 = vst [vmem:[%s6712_s6 + $0x18] sm:$0xff] %v3986_v45  ;;  %v3952_v55 = vadd.f32 %v5315_v46, %v6708_v30 }
 0x1f7   : > { %4021 = vst [vmem:[%s6712_s6 + $0x10] sm:$0xff] %v3985_v51  ;;  %v3951_v57 = vadd.f32 %v5316_v53, %v6708_v30  ;;  %v5266_v59 = vpop.f32.mrb[6].mxu0 }
 0x1f8   : > { %v3988_v61 = vmax.f32 %v3952_v55, 0.0  ;;  %v5317_v63 = vadd.f32 %v5266_v59, %v4986_v18  ;;  %v3755_v2 = vpop.f32.mrb[7].mxu0 }
 0x1f9   : > { %v3987_v4 = vmax.f32 %v3951_v57, 0.0  ;;  %v5318_v47 = vadd.f32 %v3755_v2, %v1620_v19 }
 0x1fa   : > { %4024 = vst [vmem:[%s6712_s6 + $0x28] sm:$0xff] %v3988_v61  ;;  %v3954_v6 = vadd.f32 %v5317_v63, %v6708_v30 }
 0x1fb   : > { %4023 = vst [vmem:[%s6712_s6 + $0x20] sm:$0xff] %v3987_v4  ;;  %v3953_v48 = vadd.f32 %v5318_v47, %v6708_v30  ;;  %v5269_v50 = vpop.f32.mrb[8].mxu0 }
 0x1fc   : > { %v3990_v52 = vmax.f32 %v3954_v6, 0.0  ;;  %v5319_v54 = vadd.f32 %v5269_v50, %v4989_v20  ;;  %v3765_v56 = vpop.f32.mrb[9].mxu0 }
 0x1fd   : > { %v3989_v58 = vmax.f32 %v3953_v48, 0.0  ;;  %v5320_v60 = vadd.f32 %v3765_v56, %v1630_v21 }
 0x1fe   : > { %4026 = vst [vmem:[%s6712_s6 + $0x38] sm:$0xff] %v3990_v52  ;;  %v3956_v62 = vadd.f32 %v5319_v54, %v6708_v30 }
 0x1ff   : > { %4025 = vst [vmem:[%s6712_s6 + $0x30] sm:$0xff] %v3989_v58  ;;  %v3955_v0 = vadd.f32 %v5320_v60, %v6708_v30  ;;  %v5272_v3 = vpop.f32.mrb[10].mxu0 }
 0x200   : > { %v3992_v5 = vmax.f32 %v3956_v62, 0.0  ;;  %v5321_v1 = vadd.f32 %v5272_v3, %v4992_v22  ;;  %v3775_v7 = vpop.f32.mrb[11].mxu0 }
 0x201   : > { %v3991_v8 = vmax.f32 %v3955_v0, 0.0  ;;  %v5322_v9 = vadd.f32 %v3775_v7, %v1640_v23 }
 0x202   : > { %4028 = vst [vmem:[%s6712_s6 + $0x48] sm:$0xff] %v3992_v5  ;;  %v3958_v10 = vadd.f32 %v5321_v1, %v6708_v30 }
 0x203   : > { %4027 = vst [vmem:[%s6712_s6 + $0x40] sm:$0xff] %v3991_v8  ;;  %v3957_v12 = vadd.f32 %v5322_v9, %v6708_v30  ;;  %v5275_v13 = vpop.f32.mrb[12].mxu0 }
 0x204   : > { %v3994_v14 = vmax.f32 %v3958_v10, 0.0  ;;  %v5323_v15 = vadd.f32 %v5275_v13, %v6690_v24  ;;  %v3785_v16 = vpop.f32.mrb[13].mxu0 }
 0x205   : > { %v3993_v17 = vmax.f32 %v3957_v12, 0.0  ;;  %v5324_v18 = vadd.f32 %v3785_v16, %v6692_v25 }
 0x206   : > { %4030 = vst [vmem:[%s6712_s6 + $0x58] sm:$0xff] %v3994_v14  ;;  %v3960_v19 = vadd.f32 %v5323_v15, %v6708_v30 }
 0x207   : > { %4029 = vst [vmem:[%s6712_s6 + $0x50] sm:$0xff] %v3993_v17  ;;  %v3959_v20 = vadd.f32 %v5324_v18, %v6708_v30  ;;  %v5278_v21 = vpop.f32.mrb[14].mxu0 }
 0x208   : > { %v3996_v22 = vmax.f32 %v3960_v19, 0.0  ;;  %v5325_v23 = vadd.f32 %v5278_v21, %v6694_v26  ;;  %v3795_v29 = vpop.f32.mrb[15].mxu0 }
 0x209   : > { %v3995_v31 = vmax.f32 %v3959_v20, 0.0  ;;  %v5326_v24 = vadd.f32 %v3795_v29, %v6696_v27 }
 0x20a   : > { %4032 = vst [vmem:[%s6712_s6 + $0x68] sm:$0xff] %v3996_v22  ;;  %v3962_v32 = vadd.f32 %v5325_v23, %v6708_v30 }
 0x20b   : > { %4031 = vst [vmem:[%s6712_s6 + $0x60] sm:$0xff] %v3995_v31  ;;  %v3961_v25 = vadd.f32 %v5326_v24, %v6708_v30  ;;  %v5281_v33 = vpop.f32.mrb[16].mxu0 }
 0x20c   : > { %v3998_v34 = vmax.f32 %v3962_v32, 0.0  ;;  %v5327_v35 = vadd.f32 %v5281_v33, %v6698_v11  ;;  %v3805_v36 = vpop.f32.mrb[17].mxu0 }
 0x20d   : > { %v3997_v37 = vmax.f32 %v3961_v25, 0.0  ;;  %v5328_v26 = vadd.f32 %v3805_v36, %v6700_v28 }
 0x20e   : > { %4034 = vst [vmem:[%s6712_s6 + $0x78] sm:$0xff] %v3998_v34  ;;  %v3964_v38 = vadd.f32 %v5327_v35, %v6708_v30 }
 0x20f   : > { %4033 = vst [vmem:[%s6712_s6 + $0x70] sm:$0xff] %v3997_v37  ;;  %v3963_v27 = vadd.f32 %v5328_v26, %v6708_v30  ;;  %v5060_v39 = vpop.f32.mrb[18].mxu1  ;;  %v5284_v40 = vpop.f32.mrb[18].mxu0 }
 0x210   : > { %v4000_v41 = vmax.f32 %v3964_v38, 0.0  ;;  %v5329_v42 = vadd.f32 %v5284_v40, %v5060_v39  ;;  %v2107_v43 = vpop.f32.mrb[19].mxu1  ;;  %v3815_v44 = vpop.f32.mrb[19].mxu0 }
 0x211   : > { %v3999_v11 = vmax.f32 %v3963_v27, 0.0  ;;  %v5330_v45 = vadd.f32 %v3815_v44, %v2107_v43 }
 0x212   : > { %4036 = vst [vmem:[%s6712_s6 + $0x88] sm:$0xff] %v4000_v41  ;;  %v3966_v46 = vadd.f32 %v5329_v42, %v6708_v30 }
 0x213   : > { %4035 = vst [vmem:[%s6712_s6 + $0x80] sm:$0xff] %v3999_v11  ;;  %v3965_v28 = vadd.f32 %v5330_v45, %v6708_v30  ;;  %v5063_v49 = vpop.f32.mrb[20].mxu1  ;;  %v5287_v51 = vpop.f32.mrb[20].mxu0 }
 0x214   : > { %v4002_v53 = vmax.f32 %v3966_v46, 0.0  ;;  %v5331_v55 = vadd.f32 %v5287_v51, %v5063_v49  ;;  %v2117_v57 = vpop.f32.mrb[21].mxu1  ;;  %v3825_v59 = vpop.f32.mrb[21].mxu0 }
 0x215   : > { %v4001_v61 = vmax.f32 %v3965_v28, 0.0  ;;  %v5332_v63 = vadd.f32 %v3825_v59, %v2117_v57 }
 0x216   : > { %4038 = vst [vmem:[%s6712_s6 + $0x98] sm:$0xff] %v4002_v53  ;;  %v3968_v2 = vadd.f32 %v5331_v55, %v6708_v30 }
 0x217   : > { %4037 = vst [vmem:[%s6712_s6 + $0x90] sm:$0xff] %v4001_v61  ;;  %v3967_v4 = vadd.f32 %v5332_v63, %v6708_v30  ;;  %v5066_v47 = vpop.f32.mrb[22].mxu1  ;;  %v5290_v6 = vpop.f32.mrb[22].mxu0 }
 0x218   : > { %v4004_v48 = vmax.f32 %v3968_v2, 0.0  ;;  %v5333_v50 = vadd.f32 %v5290_v6, %v5066_v47  ;;  %v2127_v52 = vpop.f32.mrb[23].mxu1  ;;  %v3835_v54 = vpop.f32.mrb[23].mxu0 }
 0x219   : > { %v4003_v56 = vmax.f32 %v3967_v4, 0.0  ;;  %v5334_v58 = vadd.f32 %v3835_v54, %v2127_v52 }
 0x21a   : > { %4040 = vst [vmem:[%s6712_s6 + $0xa8] sm:$0xff] %v4004_v48  ;;  %v3970_v60 = vadd.f32 %v5333_v50, %v6708_v30 }
 0x21b   : > { %4039 = vst [vmem:[%s6712_s6 + $0xa0] sm:$0xff] %v4003_v56  ;;  %v3969_v62 = vadd.f32 %v5334_v58, %v6708_v30  ;;  %v5069_v0 = vpop.f32.mrb[24].mxu1  ;;  %v5293_v3 = vpop.f32.mrb[24].mxu0 }
 0x21c   : > { %v4006_v5 = vmax.f32 %v3970_v60, 0.0  ;;  %v5335_v1 = vadd.f32 %v5293_v3, %v5069_v0  ;;  %v2137_v7 = vpop.f32.mrb[25].mxu1  ;;  %v3845_v8 = vpop.f32.mrb[25].mxu0 }
 0x21d   : > { %v4005_v9 = vmax.f32 %v3969_v62, 0.0  ;;  %v5336_v10 = vadd.f32 %v3845_v8, %v2137_v7 }
 0x21e   : > { %4042 = vst [vmem:[%s6712_s6 + $0xb8] sm:$0xff] %v4006_v5  ;;  %v3972_v12 = vadd.f32 %v5335_v1, %v6708_v30 }
 0x21f   : > { %4041 = vst [vmem:[%s6712_s6 + $0xb0] sm:$0xff] %v4005_v9  ;;  %v3971_v13 = vadd.f32 %v5336_v10, %v6708_v30  ;;  %v5072_v14 = vpop.f32.mrb[26].mxu1  ;;  %v5296_v15 = vpop.f32.mrb[26].mxu0 }
 0x220   : > { %v4008_v16 = vmax.f32 %v3972_v12, 0.0  ;;  %v5337_v17 = vadd.f32 %v5296_v15, %v5072_v14  ;;  %v2147_v18 = vpop.f32.mrb[27].mxu1  ;;  %v3855_v19 = vpop.f32.mrb[27].mxu0 }
 0x221   : > { %v4007_v20 = vmax.f32 %v3971_v13, 0.0  ;;  %v5338_v21 = vadd.f32 %v3855_v19, %v2147_v18 }
 0x222   : > { %4044 = vst [vmem:[%s6712_s6 + $0xc8] sm:$0xff] %v4008_v16  ;;  %v3974_v22 = vadd.f32 %v5337_v17, %v6708_v30 }
 0x223   : > { %4043 = vst [vmem:[%s6712_s6 + $0xc0] sm:$0xff] %v4007_v20  ;;  %v3973_v23 = vadd.f32 %v5338_v21, %v6708_v30  ;;  %v5075_v29 = vpop.f32.mrb[28].mxu1  ;;  %v5299_v31 = vpop.f32.mrb[28].mxu0 }
 0x224   : > { %v4010_v24 = vmax.f32 %v3974_v22, 0.0  ;;  %v5339_v32 = vadd.f32 %v5299_v31, %v5075_v29  ;;  %v2157_v25 = vpop.f32.mrb[29].mxu1  ;;  %v3865_v33 = vpop.f32.mrb[29].mxu0 }
 0x225   : > { %v4009_v34 = vmax.f32 %v3973_v23, 0.0  ;;  %v5340_v35 = vadd.f32 %v3865_v33, %v2157_v25 }
 0x226   : > { %4046 = vst [vmem:[%s6712_s6 + $0xd8] sm:$0xff] %v4010_v24  ;;  %v3976_v36 = vadd.f32 %v5339_v32, %v6708_v30 }
 0x227   : > { %4045 = vst [vmem:[%s6712_s6 + $0xd0] sm:$0xff] %v4009_v34  ;;  %v3975_v37 = vadd.f32 %v5340_v35, %v6708_v30  ;;  %v5078_v26 = vpop.f32.mrb[30].mxu1  ;;  %v5302_v38 = vpop.f32.mrb[30].mxu0 }
 0x228   : > { %v4012_v27 = vmax.f32 %v3976_v36, 0.0  ;;  %v5341_v39 = vadd.f32 %v5302_v38, %v5078_v26  ;;  %v2167_v40 = vpop.f32.mrb[31].mxu1  ;;  %v3875_v41 = vpop.f32.mrb[31].mxu0 }
 0x229   : > { %v4011_v42 = vmax.f32 %v3975_v37, 0.0  ;;  %v5342_v43 = vadd.f32 %v3875_v41, %v2167_v40 }
 0x22a   : > { %4048 = vst [vmem:[%s6712_s6 + $0xe8] sm:$0xff] %v4012_v27  ;;  %v3978_v44 = vadd.f32 %v5341_v39, %v6708_v30 }
 0x22b   : > { %4047 = vst [vmem:[%s6712_s6 + $0xe0] sm:$0xff] %v4011_v42  ;;  %v3977_v11 = vadd.f32 %v5342_v43, %v6708_v30  ;;  %v5081_v45 = vpop.f32.mrb[32].mxu1  ;;  %v5305_v46 = vpop.f32.mrb[32].mxu0 }
 0x22c   : > { %v4014_v28 = vmax.f32 %v3978_v44, 0.0  ;;  %v5343_v49 = vadd.f32 %v5305_v46, %v5081_v45  ;;  %v2177_v51 = vpop.f32.mrb[33].mxu1  ;;  %v3885_v53 = vpop.f32.mrb[33].mxu0 }
 0x22d   : > { %v4013_v55 = vmax.f32 %v3977_v11, 0.0  ;;  %v5344_v57 = vadd.f32 %v3885_v53, %v2177_v51 }
 0x22e   : > { %4050 = vst [vmem:[%s6712_s6 + $0xf8] sm:$0xff] %v4014_v28  ;;  %v3980_v59 = vadd.f32 %v5343_v49, %v6708_v30 }
 0x22f   : > { %4049 = vst [vmem:[%s6712_s6 + $0xf0] sm:$0xff] %v4013_v55  ;;  %v3979_v61 = vadd.f32 %v5344_v57, %v6708_v30  ;;  %v5084_v63 = vpop.f32.mrb[34].mxu1  ;;  %v5308_v2 = vpop.f32.mrb[34].mxu0 }
 0x230   : > { %v4016_v4 = vmax.f32 %v3980_v59, 0.0  ;;  %v5345_v47 = vadd.f32 %v5308_v2, %v5084_v63  ;;  %v2187_v6 = vpop.f32.mrb[35].mxu1  ;;  %v3895_v48 = vpop.f32.mrb[35].mxu0 }
 0x231   : > { %v4015_v50 = vmax.f32 %v3979_v61, 0.0  ;;  %v5346_v52 = vadd.f32 %v3895_v48, %v2187_v6 }
 0x232   : > { %4052 = vst [vmem:[%s6712_s6 + $0x108] sm:$0xff] %v4016_v4  ;;  %v3982_v54 = vadd.f32 %v5345_v47, %v6708_v30 }
 0x233   : > { %4051 = vst [vmem:[%s6712_s6 + $0x100] sm:$0xff] %v4015_v50  ;;  %v3981_v56 = vadd.f32 %v5346_v52, %v6708_v30 }
 0x234   : > { %v4018_v58 = vmax.f32 %v3982_v54, 0.0 }
 0x235   : > { %v4017_v60 = vmax.f32 %v3981_v56, 0.0 }
 0x236   : > { %4054 = vst [vmem:[%s6712_s6 + $0x118] sm:$0xff] %v4018_v58 }
 0x237   : > { %4053 = vst [vmem:[%s6712_s6 + $0x110] sm:$0xff] %v4017_v60 }
 0x238   : > { %5656 = shalt.err (!%p5653_p3)
}
 0x239   : > { %s5657_s25 = scalar_lea.hbm %s6793_s11, 4608  ;;  %s5661_s28 = scalar_lea.hbm %s6845_s3, 9216 }
 0x23a   : > { %p5658_p4 = scmp.ne.s32.totalorder %s6793_s11, %s5657_s25  ;;  %p5662_p9 = scmp.lt.u32.totalorder %s6793_s11, %s6845_s3 }
 0x23b   : > { %p5663_p10 = scmp.lt.u32.totalorder %s5661_s28, %s5657_s25  ;;  %p5665_p12 = scmp.lt.u32.totalorder %s5657_s25, %s6793_s11 }
 0x23c   : > { %p5659_p7 = pnand %p5658_p4, %p5768_p5 }
 0x23d   : > { %p5664_p11 = por %p5663_p10, %p5662_p9 }
 0x23e   : > { %p5660_p8 = pneg %p5659_p7 }
 0x23f   : > { %p5666_p13 = por %p5665_p12, %p5664_p11 }
 0x241   : > { %p5667_p0 = pnand %p5666_p13, %p5660_p8 }
 0x243   : > { %5670 = shalt.err (!%p5667_p0)
}
 0x244   : > { %s5708_s4 = smov 128   ;;  %s5709_s5 = smov 8  }
 0x245   : > { %5602 = dma.vmem_to_hbm [thread:$0]  (%p5768_p5), %s6795_s8, 4608, %s6793_s11, %s6801_s16, %s5708_s4, %s5708_s4, %s5709_s5  }
 0x246 PF: > { %p5608_p1 = scmp.ge.s32.totalorder %s5705_s15, 2  ;;  %s4084_s6 = sand.u32 1, %s5693_s12  }
 0x247   : > { %s4085_s7 = scalar_lea.sflag [#allocation3], %s4084_s6 }
 0x248   : > { %p5605_p2 = pnand %p5608_p1, %p5772_p6 }
 0x24a   : > { %5688 = dma.done.wait (!%p5605_p2), %s4085_s7, 4608  }
 0x24b   : > { %5690 = vsyncadd (!%p5605_p2), %s4085_s7, 4294962688  ;;  %p13_p3 = scmp.ge.s32.totalorder %s5755_s18, 4   ;;  %s6848_s12 = smov %s5697_s13 }
 0x24c   : > { %s6849_s13 = smov %s5701_s14  ;;  %s6850_s14 = smov %s5766_s21 }
 0x24d   : > { %s6851_s15 = smov %s5755_s18  ;;  %15 = sbr.rel (!%p13_p3) target bundleno = 3 (0x3), region = 75 }
 0x254   :  { %4090 = vsyncpa [#allocation3], 1 }
 0x255   :  { %4092 = vsyncpa [#allocation3 + $0x1], 1 }

</bundles_post_ra>
